<compile_context>
chip_gen: v5e
topology: v5e:2x2
jax: 0.10.0
libtpu: 0.0.40
codegen_flags: <defaults>
</compile_context>

<pallas_src>
from functools import partial

import numpy as np
import jax
import jax.numpy as jnp
from jax import lax
from jax.scipy.special import erf as _erf_exact   # reference only (outside kernel)
from jax.experimental import pallas as pl
from jax.experimental.pallas import tpu as pltpu


# ----------------------------- math helpers ----------------------------------
_SQRT1_2 = 0.7071067811865476
_GELU_C = 0.7978845608028654   # sqrt(2/pi)


def _gelu_kernel(x):
    # tanh-form GELU: ~6 VALU ops + 1 EUP tanh (EUP slot is otherwise idle).
    # |deviation| from torch's exact erf GELU < ~5e-4 per activation.
    return 0.5 * x * (1.0 + jnp.tanh(_GELU_C * (x + 0.044715 * x * x * x)))


def _sigmoid_kernel(z):
    # exact: sigmoid(z) = 0.5*(tanh(z/2)+1); tanh goes to the EUP, no VALU divide.
    return 0.5 * (jnp.tanh(0.5 * z) + 1.0)


# ----------------------------- Pallas kernel ---------------------------------
def _make_xc_l_kernel(*, n_use, ueg_limit, one_e, lob):
    log_shift = float(np.log(lob - 1.0)) if lob else 0.0

    def kernel(x_ref, w1_ref, b1_ref, w2_ref, b2_ref, w3_ref, b3_ref,
               w4_ref, b4_ref, out_ref):
        # x_ref : (8, TN)        gathered descriptors (padded to 8 sublanes)
        # wK/bK : tiny resident weight tiles
        # out   : (1, TN)        lane-dense result
        x = x_ref[...]

        def dense(w_ref, b_ref, h):
            # (out, in) @ (in, TN) -> (out, TN), f32 accumulate on the MXU
            return lax.dot_general(w_ref[...], h, (((1,), (0,)), ((), ())),
                                   preferred_element_type=jnp.float32) + b_ref[...]

        h = _gelu_kernel(dense(w1_ref, b1_ref, x))
        h = _gelu_kernel(dense(w2_ref, b2_ref, h))
        h = _gelu_kernel(dense(w3_ref, b3_ref, h))
        # last layer (16 -> 1): VPU multiply + sublane (XLU) reduce (avoids M=1 matmul)
        res = jnp.sum(w4_ref[...] * h, axis=0, keepdims=True) + b4_ref[...]   # (1, TN)

        if ueg_limit:
            scale = x[0:1, :]
            if n_use > 1:
                scale = scale + jnp.tanh(x[1:2, :]) ** 2
            if n_use > 2:
                scale = scale + jnp.sum(x[2:n_use, :], axis=0, keepdims=True)
            res = res * scale
        # else: ueg_lim = 1, ueg_lim_a = ueg_lim_nl = 0  ->  res unchanged

        if lob:
            res = lob * _sigmoid_kernel(res - log_shift) - 1.0

        if one_e:
            alpha = jnp.exp(x[1:2, :]) * 2.0 - 1.0
            u = jnp.exp(x[2:3, :])
            switch = jnp.exp(-0.1 * alpha * u)
            res = (1.0 - switch) * res + switch * (u - 1.0)

        out_ref[...] = res

    return kernel


def _pick_tile_n(n_total, max_tile):
    """Lane-tile size: as large as possible (multiple of 128, <= max_tile) while
    keeping >= 2 grid steps when the data allows (v7x has 2 TensorCores)."""
    n128 = pl.cdiv(n_total, 128) * 128
    half = (n128 // 2 // 128) * 128          # biggest tile that still yields >=2 steps
    return int(min(max_tile, max(128, half)))


@partial(jax.jit, static_argnames=("use", "ueg_limit", "lob", "one_e", "max_tile"))
def xc_l_forward(rho, params, *, use, ueg_limit=False, lob=1.804, one_e=False,
                 max_tile=16384):
    """Pallas forward of XC_L.  rho: (..., n_features) f32; params: 4 (W, b).
    `use` must be a tuple of static descriptor indices (matches the module,
    where self.use is fixed at __init__)."""
    (w1, b1), (w2, b2), (w3, b3), (w4, b4) = params
    n_hidden = w1.shape[0]
    n_use = len(use)
    feat_pad = 8
    assert n_use <= feat_pad
    if one_e:
        assert n_use >= 3, "one_e path needs use[1] and use[2]"

    lead_shape = rho.shape[:-1]
    n_total = int(np.prod(lead_shape))
    tile_n = _pick_tile_n(n_total, max_tile)
    n_pad = pl.cdiv(n_total, tile_n) * tile_n

    # Gather only the used descriptor columns, go feature-major so grid points
    # are lane-dense, pad features -> 8 sublanes, grid points -> tile multiple.
    # (allow_input_fusion + jit lets XLA fuse this into the pallas operand.)
    x = jnp.take(rho.astype(jnp.float32), jnp.asarray(use, dtype=jnp.int32), axis=-1)
    x = jnp.transpose(x.reshape(n_total, n_use))                         # (n_use, Ntot)
    x = jnp.pad(x, ((0, feat_pad - n_use), (0, n_pad - n_total)))        # (8, Npad)

    w1p = jnp.pad(w1.astype(jnp.float32), ((0, 0), (0, feat_pad - n_use)))  # (H, 8)
    b1c = b1.astype(jnp.float32).reshape(n_hidden, 1)
    w2c = w2.astype(jnp.float32)
    b2c = b2.astype(jnp.float32).reshape(n_hidden, 1)
    w3c = w3.astype(jnp.float32)
    b3c = b3.astype(jnp.float32).reshape(n_hidden, 1)
    w4c = w4.astype(jnp.float32).reshape(1, n_hidden).T                  # (H, 1)
    b4c = b4.astype(jnp.float32).reshape(1, 1)

    const = lambda i: (0, 0)   # weights stay resident in VMEM (DMA'd once)
    out = pl.pallas_call(
        _make_xc_l_kernel(n_use=n_use, ueg_limit=ueg_limit, one_e=one_e, lob=lob),
        out_shape=jax.ShapeDtypeStruct((1, n_pad), jnp.float32),
        grid=(n_pad // tile_n,),
        in_specs=[
            pl.BlockSpec((feat_pad, tile_n), lambda i: (0, i)),
            pl.BlockSpec((n_hidden, feat_pad), const),
            pl.BlockSpec((n_hidden, 1), const),
            pl.BlockSpec((n_hidden, n_hidden), const),
            pl.BlockSpec((n_hidden, 1), const),
            pl.BlockSpec((n_hidden, n_hidden), const),
            pl.BlockSpec((n_hidden, 1), const),
            pl.BlockSpec((n_hidden, 1), const),
            pl.BlockSpec((1, 1), const),
        ],
        out_specs=pl.BlockSpec((1, tile_n), lambda i: (0, i)),
        compiler_params=pltpu.CompilerParams(
            dimension_semantics=("parallel",),           # both v7x TCs; no-op v5e/v6e
            allow_input_fusion=[True] * 9),              # fuse gather/transpose/pad in
    )(x, w1p, b1c, w2c, b2c, w3c, b3c, w4c, b4c)

    return out[0, :n_total].reshape(lead_shape)


# ------------------------- pure-JAX reference --------------------------------
def xc_l_reference(rho, params, *, use, ueg_limit=False, lob=1.804, one_e=False):
    def gelu_exact(v):
        return 0.5 * v * (1.0 + _erf_exact(v * _SQRT1_2))

    (w1, b1), (w2, b2), (w3, b3), (w4, b4) = params
    x = jnp.take(rho, jnp.asarray(use), axis=-1)
    h = gelu_exact(x @ w1.T + b1)
    h = gelu_exact(h @ w2.T + b2)
    h = gelu_exact(h @ w3.T + b3)
    squeezed = (h @ w4.T + b4)[..., 0]

    if ueg_limit:
        ueg_lim = rho[..., use[0]]
        ueg_lim_a = jnp.tanh(rho[..., use[1]]) ** 2 if len(use) > 1 else 0.0
        ueg_lim_nl = (jnp.sum(jnp.take(rho, jnp.asarray(use[2:]), axis=-1), axis=-1)
                      if len(use) > 2 else 0.0)
    else:
        ueg_lim, ueg_lim_a, ueg_lim_nl = 1.0, 0.0, 0.0

    z = squeezed * (ueg_lim + ueg_lim_a + ueg_lim_nl)
    if lob:
        result = lob / (1.0 + jnp.exp(-(z - np.log(lob - 1.0)))) - 1.0
    else:
        result = z

    if one_e:
        alpha = jnp.exp(rho[..., use[1]]) * 2.0 - 1.0
        u = jnp.exp(rho[..., use[2]])
        switch = jnp.exp(-0.1 * alpha * u)
        result = (1.0 - switch) * result + switch * (u - 1.0)
    return result


def init_params(key, n_input, n_hidden):
    """torch.nn.Linear default init: U(-1/sqrt(fan_in), 1/sqrt(fan_in))."""
    dims = [(n_hidden, n_input), (n_hidden, n_hidden),
            (n_hidden, n_hidden), (1, n_hidden)]
    params = []
    for out_d, in_d in dims:
        key, kw, kb = jax.random.split(key, 3)
        bound = 1.0 / np.sqrt(in_d)
        w = jax.random.uniform(kw, (out_d, in_d), jnp.float32, -bound, bound)
        b = jax.random.uniform(kb, (out_d,), jnp.float32, -bound, bound)
        params.append((w, b))
    return params


# TODO(synk): self.use is a torch LongTensor of descriptor indices selected at
# construction time; it is reproduced here as a static Python tuple (trace-time
# gather), which matches the module since `use` never changes after __init__.

if __name__ == "__main__":
    key = jax.random.PRNGKey(0)
    k_rho_a, k_rho_b, k_par_a, k_par_b = jax.random.split(key, 4)

    spin, n_grid, n_hidden = 2, 1024, 16

    # Tolerance note: the kernel uses the tanh-form GELU (vs torch's exact erf
    # GELU); accumulated through 3 stacked layers the deviation stays ~1e-3.
    RTOL = ATOL = 3e-3

    # --- Config A: module defaults (ueg_limit=False, lob=1.804, one_e=False) ---
    n_input_a = 2
    rho_a = jax.random.normal(k_rho_a, (spin, n_grid, n_input_a), jnp.float32) * 0.5
    params_a = init_params(k_par_a, n_input_a, n_hidden)
    use_a = (0, 1)
    out_a = jax.block_until_ready(xc_l_forward(rho_a, params_a, use=use_a))
    ref_a = jax.block_until_ready(xc_l_reference(rho_a, params_a, use=use_a))
    np.testing.assert_allclose(np.asarray(out_a), np.asarray(ref_a),
                               rtol=RTOL, atol=ATOL)

    # --- Config B: ueg_limit=True and one_e=True (exercise the extra branches) ---
    n_input_b = 3
    rho_b = jax.random.normal(k_rho_b, (spin, n_grid, n_input_b), jnp.float32) * 0.5
    params_b = init_params(k_par_b, n_input_b, n_hidden)
    use_b = (0, 1, 2)
    out_b = jax.block_until_ready(
        xc_l_forward(rho_b, params_b, use=use_b, ueg_limit=True, one_e=True))
    ref_b = jax.block_until_ready(
        xc_l_reference(rho_b, params_b, use=use_b, ueg_limit=True, one_e=True))
    np.testing.assert_allclose(np.asarray(out_b), np.asarray(ref_b),
                               rtol=RTOL, atol=ATOL)

    print("KERNEL_OK")
</pallas_src>

<mosaic_0001>
module attributes {stable_mosaic.version = 11 : i64} {
  func.func @kernel(%arg0: i32, %arg1: memref<8x1024xf32, #tpu.memory_space<vmem>>, %arg2: memref<16x8xf32, #tpu.memory_space<vmem>>, %arg3: memref<16x1xf32, #tpu.memory_space<vmem>>, %arg4: memref<16x16xf32, #tpu.memory_space<vmem>>, %arg5: memref<16x1xf32, #tpu.memory_space<vmem>>, %arg6: memref<16x16xf32, #tpu.memory_space<vmem>>, %arg7: memref<16x1xf32, #tpu.memory_space<vmem>>, %arg8: memref<16x1xf32, #tpu.memory_space<vmem>>, %arg9: memref<1x1xf32, #tpu.memory_space<vmem>>, %arg10: memref<1x1024xf32, #tpu.memory_space<vmem>>) attributes {dimension_semantics = [#tpu.dimension_semantics<parallel>], iteration_bounds = array<i64: 2>, scalar_prefetch = 0 : i64, scratch_operands = 0 : i64, tpu.core_type = #tpu.core_type<tc>, window_params = [{transform_indices = @transform_0, window_bounds = array<i64: 8, 1024>}, {pipeline_mode = #tpu.pipeline_mode<synchronous>, transform_indices = @transform_1, window_bounds = array<i64: 16, 8>}, {pipeline_mode = #tpu.pipeline_mode<synchronous>, transform_indices = @transform_2, window_bounds = array<i64: 16, 1>}, {pipeline_mode = #tpu.pipeline_mode<synchronous>, transform_indices = @transform_3, window_bounds = array<i64: 16, 16>}, {pipeline_mode = #tpu.pipeline_mode<synchronous>, transform_indices = @transform_4, window_bounds = array<i64: 16, 1>}, {pipeline_mode = #tpu.pipeline_mode<synchronous>, transform_indices = @transform_5, window_bounds = array<i64: 16, 16>}, {pipeline_mode = #tpu.pipeline_mode<synchronous>, transform_indices = @transform_6, window_bounds = array<i64: 16, 1>}, {pipeline_mode = #tpu.pipeline_mode<synchronous>, transform_indices = @transform_7, window_bounds = array<i64: 16, 1>}, {pipeline_mode = #tpu.pipeline_mode<synchronous>, transform_indices = @transform_8, window_bounds = array<i64: 1, 1>}, {transform_indices = @transform_9, window_bounds = array<i64: 1, 1024>}]} {
    %c0 = arith.constant 0 : index
    %c0_0 = arith.constant 0 : index
    %0 = vector.load %arg1[%c0, %c0_0] : memref<8x1024xf32, #tpu.memory_space<vmem>>, vector<8x1024xf32>
    %c0_1 = arith.constant 0 : index
    %c0_2 = arith.constant 0 : index
    %1 = vector.load %arg2[%c0_1, %c0_2] : memref<16x8xf32, #tpu.memory_space<vmem>>, vector<16x8xf32>
    %cst = arith.constant dense<0.000000e+00> : vector<16x1024xf32>
    %2 = tpu.matmul %1, %0, %cst {dimension_numbers = #tpu.dot_dimension_numbers<[1], [0], [0], [1], [0, 0, 1, 1], [], []>} : vector<16x8xf32>, vector<8x1024xf32>, vector<16x1024xf32> -> vector<16x1024xf32>
    %c0_3 = arith.constant 0 : index
    %c0_4 = arith.constant 0 : index
    %3 = vector.load %arg3[%c0_3, %c0_4] : memref<16x1xf32, #tpu.memory_space<vmem>>, vector<16x1xf32>
    %4 = vector.broadcast %3 : vector<16x1xf32> to vector<16x1024xf32>
    %5 = arith.addf %2, %4 : vector<16x1024xf32>
    %cst_5 = arith.constant 5.000000e-01 : f32
    %6 = vector.broadcast %cst_5 : f32 to vector<16x1024xf32>
    %7 = arith.mulf %6, %5 : vector<16x1024xf32>
    %cst_6 = arith.constant 4.471500e-02 : f32
    %8 = vector.broadcast %cst_6 : f32 to vector<16x1024xf32>
    %9 = arith.mulf %8, %5 : vector<16x1024xf32>
    %10 = arith.mulf %9, %5 : vector<16x1024xf32>
    %11 = arith.mulf %10, %5 : vector<16x1024xf32>
    %12 = arith.addf %5, %11 : vector<16x1024xf32>
    %cst_7 = arith.constant 0.797884583 : f32
    %13 = vector.broadcast %cst_7 : f32 to vector<16x1024xf32>
    %14 = arith.mulf %13, %12 : vector<16x1024xf32>
    %15 = math.tanh %14 : vector<16x1024xf32>
    %cst_8 = arith.constant 1.000000e+00 : f32
    %16 = vector.broadcast %cst_8 : f32 to vector<16x1024xf32>
    %17 = arith.addf %16, %15 : vector<16x1024xf32>
    %18 = arith.mulf %7, %17 : vector<16x1024xf32>
    %c0_9 = arith.constant 0 : index
    %c0_10 = arith.constant 0 : index
    %19 = vector.load %arg4[%c0_9, %c0_10] : memref<16x16xf32, #tpu.memory_space<vmem>>, vector<16x16xf32>
    %cst_11 = arith.constant dense<0.000000e+00> : vector<16x1024xf32>
    %20 = tpu.matmul %19, %18, %cst_11 {dimension_numbers = #tpu.dot_dimension_numbers<[1], [0], [0], [1], [0, 0, 1, 1], [], []>} : vector<16x16xf32>, vector<16x1024xf32>, vector<16x1024xf32> -> vector<16x1024xf32>
    %c0_12 = arith.constant 0 : index
    %c0_13 = arith.constant 0 : index
    %21 = vector.load %arg5[%c0_12, %c0_13] : memref<16x1xf32, #tpu.memory_space<vmem>>, vector<16x1xf32>
    %22 = vector.broadcast %21 : vector<16x1xf32> to vector<16x1024xf32>
    %23 = arith.addf %20, %22 : vector<16x1024xf32>
    %cst_14 = arith.constant 5.000000e-01 : f32
    %24 = vector.broadcast %cst_14 : f32 to vector<16x1024xf32>
    %25 = arith.mulf %24, %23 : vector<16x1024xf32>
    %cst_15 = arith.constant 4.471500e-02 : f32
    %26 = vector.broadcast %cst_15 : f32 to vector<16x1024xf32>
    %27 = arith.mulf %26, %23 : vector<16x1024xf32>
    %28 = arith.mulf %27, %23 : vector<16x1024xf32>
    %29 = arith.mulf %28, %23 : vector<16x1024xf32>
    %30 = arith.addf %23, %29 : vector<16x1024xf32>
    %cst_16 = arith.constant 0.797884583 : f32
    %31 = vector.broadcast %cst_16 : f32 to vector<16x1024xf32>
    %32 = arith.mulf %31, %30 : vector<16x1024xf32>
    %33 = math.tanh %32 : vector<16x1024xf32>
    %cst_17 = arith.constant 1.000000e+00 : f32
    %34 = vector.broadcast %cst_17 : f32 to vector<16x1024xf32>
    %35 = arith.addf %34, %33 : vector<16x1024xf32>
    %36 = arith.mulf %25, %35 : vector<16x1024xf32>
    %c0_18 = arith.constant 0 : index
    %c0_19 = arith.constant 0 : index
    %37 = vector.load %arg6[%c0_18, %c0_19] : memref<16x16xf32, #tpu.memory_space<vmem>>, vector<16x16xf32>
    %cst_20 = arith.constant dense<0.000000e+00> : vector<16x1024xf32>
    %38 = tpu.matmul %37, %36, %cst_20 {dimension_numbers = #tpu.dot_dimension_numbers<[1], [0], [0], [1], [0, 0, 1, 1], [], []>} : vector<16x16xf32>, vector<16x1024xf32>, vector<16x1024xf32> -> vector<16x1024xf32>
    %c0_21 = arith.constant 0 : index
    %c0_22 = arith.constant 0 : index
    %39 = vector.load %arg7[%c0_21, %c0_22] : memref<16x1xf32, #tpu.memory_space<vmem>>, vector<16x1xf32>
    %40 = vector.broadcast %39 : vector<16x1xf32> to vector<16x1024xf32>
    %41 = arith.addf %38, %40 : vector<16x1024xf32>
    %cst_23 = arith.constant 5.000000e-01 : f32
    %42 = vector.broadcast %cst_23 : f32 to vector<16x1024xf32>
    %43 = arith.mulf %42, %41 : vector<16x1024xf32>
    %cst_24 = arith.constant 4.471500e-02 : f32
    %44 = vector.broadcast %cst_24 : f32 to vector<16x1024xf32>
    %45 = arith.mulf %44, %41 : vector<16x1024xf32>
    %46 = arith.mulf %45, %41 : vector<16x1024xf32>
    %47 = arith.mulf %46, %41 : vector<16x1024xf32>
    %48 = arith.addf %41, %47 : vector<16x1024xf32>
    %cst_25 = arith.constant 0.797884583 : f32
    %49 = vector.broadcast %cst_25 : f32 to vector<16x1024xf32>
    %50 = arith.mulf %49, %48 : vector<16x1024xf32>
    %51 = math.tanh %50 : vector<16x1024xf32>
    %cst_26 = arith.constant 1.000000e+00 : f32
    %52 = vector.broadcast %cst_26 : f32 to vector<16x1024xf32>
    %53 = arith.addf %52, %51 : vector<16x1024xf32>
    %54 = arith.mulf %43, %53 : vector<16x1024xf32>
    %c0_27 = arith.constant 0 : index
    %c0_28 = arith.constant 0 : index
    %55 = vector.load %arg8[%c0_27, %c0_28] : memref<16x1xf32, #tpu.memory_space<vmem>>, vector<16x1xf32>
    %56 = vector.broadcast %55 : vector<16x1xf32> to vector<16x1024xf32>
    %57 = arith.mulf %56, %54 : vector<16x1024xf32>
    %cst_29 = arith.constant dense<0.000000e+00> : vector<1024xf32>
    %58 = vector.multi_reduction <add>, %57, %cst_29 [0] : vector<16x1024xf32> to vector<1024xf32>
    %59 = vector.shape_cast %58 : vector<1024xf32> to vector<1x1024xf32>
    %c0_30 = arith.constant 0 : index
    %c0_31 = arith.constant 0 : index
    %60 = vector.load %arg9[%c0_30, %c0_31] : memref<1x1xf32, #tpu.memory_space<vmem>>, vector<1x1xf32>
    %61 = vector.broadcast %60 : vector<1x1xf32> to vector<1x1024xf32>
    %62 = arith.addf %59, %61 : vector<1x1024xf32>
    %cst_32 = arith.constant -0.21815601 : f32
    %63 = vector.broadcast %cst_32 : f32 to vector<1x1024xf32>
    %64 = arith.subf %62, %63 : vector<1x1024xf32>
    %cst_33 = arith.constant 5.000000e-01 : f32
    %65 = vector.broadcast %cst_33 : f32 to vector<1x1024xf32>
    %66 = arith.mulf %65, %64 : vector<1x1024xf32>
    %67 = math.tanh %66 : vector<1x1024xf32>
    %cst_34 = arith.constant 1.000000e+00 : f32
    %68 = vector.broadcast %cst_34 : f32 to vector<1x1024xf32>
    %69 = arith.addf %67, %68 : vector<1x1024xf32>
    %cst_35 = arith.constant 5.000000e-01 : f32
    %70 = vector.broadcast %cst_35 : f32 to vector<1x1024xf32>
    %71 = arith.mulf %70, %69 : vector<1x1024xf32>
    %cst_36 = arith.constant 1.804000e+00 : f32
    %72 = vector.broadcast %cst_36 : f32 to vector<1x1024xf32>
    %73 = arith.mulf %72, %71 : vector<1x1024xf32>
    %cst_37 = arith.constant 1.000000e+00 : f32
    %74 = vector.broadcast %cst_37 : f32 to vector<1x1024xf32>
    %75 = arith.subf %73, %74 : vector<1x1024xf32>
    %c0_38 = arith.constant 0 : index
    %c0_39 = arith.constant 0 : index
    %76 = vector.load %arg10[%c0_38, %c0_39] : memref<1x1024xf32, #tpu.memory_space<vmem>>, vector<1x1024xf32>
    tpu.vector_store %arg10[%c0_38, %c0_39], %75 {strides = array<i32>} : memref<1x1024xf32, #tpu.memory_space<vmem>>, vector<1x1024xf32>,
    return
  }
  func.func @transform_0(%arg0: i32) -> (i32, i32) {
    %c0_i32 = arith.constant 0 : i32
    %c0_i32_0 = arith.constant 0 : i32
    return %c0_i32, %arg0 : i32, i32
  }
  func.func @transform_1(%arg0: i32) -> (i32, i32) {
    %c0_i32 = arith.constant 0 : i32
    %c0_i32_0 = arith.constant 0 : i32
    %c0_i32_1 = arith.constant 0 : i32
    return %c0_i32, %c0_i32_0 : i32, i32
  }
  func.func @transform_2(%arg0: i32) -> (i32, i32) {
    %c0_i32 = arith.constant 0 : i32
    %c0_i32_0 = arith.constant 0 : i32
    %c0_i32_1 = arith.constant 0 : i32
    return %c0_i32, %c0_i32_0 : i32, i32
  }
  func.func @transform_3(%arg0: i32) -> (i32, i32) {
    %c0_i32 = arith.constant 0 : i32
    %c0_i32_0 = arith.constant 0 : i32
    %c0_i32_1 = arith.constant 0 : i32
    return %c0_i32, %c0_i32_0 : i32, i32
  }
  func.func @transform_4(%arg0: i32) -> (i32, i32) {
    %c0_i32 = arith.constant 0 : i32
    %c0_i32_0 = arith.constant 0 : i32
    %c0_i32_1 = arith.constant 0 : i32
    return %c0_i32, %c0_i32_0 : i32, i32
  }
  func.func @transform_5(%arg0: i32) -> (i32, i32) {
    %c0_i32 = arith.constant 0 : i32
    %c0_i32_0 = arith.constant 0 : i32
    %c0_i32_1 = arith.constant 0 : i32
    return %c0_i32, %c0_i32_0 : i32, i32
  }
  func.func @transform_6(%arg0: i32) -> (i32, i32) {
    %c0_i32 = arith.constant 0 : i32
    %c0_i32_0 = arith.constant 0 : i32
    %c0_i32_1 = arith.constant 0 : i32
    return %c0_i32, %c0_i32_0 : i32, i32
  }
  func.func @transform_7(%arg0: i32) -> (i32, i32) {
    %c0_i32 = arith.constant 0 : i32
    %c0_i32_0 = arith.constant 0 : i32
    %c0_i32_1 = arith.constant 0 : i32
    return %c0_i32, %c0_i32_0 : i32, i32
  }
  func.func @transform_8(%arg0: i32) -> (i32, i32) {
    %c0_i32 = arith.constant 0 : i32
    %c0_i32_0 = arith.constant 0 : i32
    %c0_i32_1 = arith.constant 0 : i32
    return %c0_i32, %c0_i32_0 : i32, i32
  }
  func.func @transform_9(%arg0: i32) -> (i32, i32) {
    %c0_i32 = arith.constant 0 : i32
    %c0_i32_0 = arith.constant 0 : i32
    return %c0_i32, %arg0 : i32, i32
  }
}

</mosaic_0001>

<bundles_post_ra>
// kernel: squeeze.1
= control target key start
LH: loop header
LB: loop body
LE: loop exit
PB: predicated region body
PF: predicated region fallthrough
CT: control target
= control target key end

     0   :  { %2 = vsyncpa [#allocation1], 0  ;;  %s120_s0 = inlined_call_operand.vmem [shape: f32[2048], index: 0, kind: input, shape index: {}]   ;;  %s121_s1 = inlined_call_operand.hbm [shape: f32[2,1024], index: 1, kind: output, shape index: {}]  }
   0x1   :  { %v3_v0 = vld [vmem:[%s120_s0] sm:$0xff]   ;;  %v72_v1 = vld [vmem:[%s120_s0 + $0x8] sm:$0xff]   ;;  %s100_s0 = smov [#allocation0]   ;;  %s65_s1 = sshll.u32 %s121_s1, 4  ;;  %s66_s1 = int_to_ptr.hbm [resolvable:$true] %s65_s1 }
   0x2   :  { %4 = vst [vmem:[#allocation2] ss:$8 sm:$0xf] %v3_v0   ;;  %s63_s10 = sshll.u32 %s100_s0, 4  ;;  %s64_s10 = int_to_ptr.vmem [resolvable:$true] %s63_s10 }
   0x3   :  { %5 = vst [vmem:[#allocation2] ss:$8 sm:$0xf0] %v3_v0  }
   0x4   :  { %9 = vst [vmem:[#allocation2 + $0x1] ss:$8 sm:$0xf] %v72_v1  }
   0x5   :  { %11 = vst [vmem:[#allocation2 + $0x1] ss:$8 sm:$0xf0] %v72_v1  }
   0xb   :  { %v14_v2 = vld [vmem:[#allocation2] sm:$0x3]  ;;  %v19_v3 = vld [vmem:[#allocation2 + $0x8] sm:$0x3]  ;;  %v25_v4 = vld [vmem:[#allocation2 + $0x10] sm:$0x3] }
   0xc   :  { %17 = vst [vmem:[#allocation0] sm:$0x3] %v14_v2  ;;  %v31_v5 = vld [vmem:[#allocation2 + $0x18] sm:$0x3]  ;;  %v37_v6 = vld [vmem:[#allocation2 + $0x20] sm:$0x3] }
   0xd   :  { %23 = vst [vmem:[#allocation0 + $0x2] sm:$0x3] %v19_v3  ;;  %v43_v7 = vld [vmem:[#allocation2 + $0x28] sm:$0x3]  ;;  %v49_v8 = vld [vmem:[#allocation2 + $0x30] sm:$0x3] }
   0xe   :  { %29 = vst [vmem:[#allocation0 + $0x4] sm:$0x3] %v25_v4  ;;  %v55_v9 = vld [vmem:[#allocation2 + $0x38] sm:$0x3] }
   0xf   :  { %35 = vst [vmem:[#allocation0 + $0x6] sm:$0x3] %v31_v5 }
  0x10   :  { %41 = vst [vmem:[#allocation0 + $0x8] sm:$0x3] %v37_v6 }
  0x11   :  { %47 = vst [vmem:[#allocation0 + $0xa] sm:$0x3] %v43_v7 }
  0x12   :  { %53 = vst [vmem:[#allocation0 + $0xc] sm:$0x3] %v49_v8 }
  0x13   :  { %59 = vst [vmem:[#allocation0 + $0xe] sm:$0x3] %v55_v9 }
  0x14   :  { %68 = dma.vmem_to_hbm [thread:$0]  %s64_s10, 256, %s66_s1, [#allocation1]  }
  0x15   :  { %98 = dma.done.wait [#allocation1], 256  }
  0x16   :  { %99 = vsyncadd [#allocation1], 4294967040 }
  0x17   :  { %71 = vsyncpa [#allocation1], 1 }

// kernel: xc_l_forward.2
= control target key start
LH: loop header
LB: loop body
LE: loop exit
PB: predicated region body
PF: predicated region fallthrough
CT: control target
= control target key end

     0   :  { %s2013_s17 = smov 0   ;;  %s2498_s0 = inlined_call_operand.vmem [shape: f32[16,1], index: 0, kind: input, shape index: {}]   ;;  %s2499_s1 = inlined_call_operand.vmem [shape: f32[16,16], index: 1, kind: input, shape index: {}]   ;;  %s2500_s2 = inlined_call_operand.vmem [shape: f32[16,1], index: 2, kind: input, shape index: {}]   ;;  %s2501_s3 = inlined_call_operand.vmem [shape: f32[16,16], index: 3, kind: input, shape index: {}]   ;;  %s2502_s4 = inlined_call_operand.vmem [shape: f32[16,1], index: 4, kind: input, shape index: {}]   ;;  %s2503_s5 = inlined_call_operand.vmem [shape: f32[16,1], index: 5, kind: input, shape index: {}]   ;;  %s2504_s6 = inlined_call_operand.<no memory space> [shape: f32[1,1], index: 6, kind: input, shape index: {}]   ;;  %s2505_s7 = inlined_call_operand.vmem [shape: f32[2,2048], index: 7, kind: input, shape index: {}]   ;;  %s2506_s8 = inlined_call_operand.<no memory space> [shape: f32[], index: 8, kind: input, shape index: {}]   ;;  %s2507_s9 = inlined_call_operand.vmem [shape: f32[16,2], index: 9, kind: input, shape index: {}]   ;;  %s2508_s10 = inlined_call_operand.vmem [shape: f32[1,2048], index: 10, kind: output, shape index: {}]  }
   0x1   :  { %v2008_v0 = vstv %s2506_s8  ;;  %v17_v1 = vstv %s2504_s6 }
   0x2   :  { %18 = vst [vmem:[#allocation12] sm:$0x1] %v17_v1 }
   0x3 LB: > { %s1735_s18 = sadd.s32 4294967295, %s1947_s17   ;;  %p1739_p0 = scmp.ge.s32.totalorder %s1947_s17, 1  ;;  %s1947_s17 = sphi %s2013_s17, %s24_s17  }
   0x4   : > { %p293_p1 = scmp.lt.s32.totalorder %s1947_s17, 3 }
   0x6   : > { %p294_p2 = pnand %p1739_p0, %p293_p1 }
   0x7   : > { %s1740_s8 = sshll.u32 (!%p294_p2), %s1735_s18, 3 }
   0x8   : > { %297 = sbr.rel (%p294_p2) target bundleno = 579 (0x243), region = 56  ;;  %p329_p3 = scmp.lt.s32.totalorder (!%p294_p2), %s1740_s8, 15 }
   0xd   : > { %v340_v2 = vlaneseq  ;;  %v456_v3 = vld [vmem:[%s2498_s0 + $0x8] sm:$0xff]  ;;  %v1949_v4 = vmov 0   ;;  %s2510_s8 = smov (!%p329_p3, %s1740_s8), 15  ;;  %v425_v7 = vld [vmem:[%s2507_s9] sm:$0xff]  ;;  %vm467_vm2 = vcmask 64512   ;;  %vm816_vm3 = vcmask 130048  }
   0xe   : > { %1826 = vset.pattern.permute.xlu0 %v1949_v4  ;;  %1827 = vset.pattern.permute.xlu1 %v1949_v4  ;;  %s1741_s20 = sshll.u32 %s2510_s8, 1  ;;  %v455_v21 = vld [vmem:[%s2498_s0] sm:$0xff]  ;;  %v1750_v26 = vld [vmem:[%s2507_s9 + $0x8] sm:$0xff]  ;;  %vm1669_vm4 = vcmask 1040384   ;;  %vm1671_vm5 = vcmask 1042434   ;;  %vm1673_vm6 = vcmask 1041408   ;;  %s337_s12 = scalar_lea.vmem %s2508_s10, %s2510_s8 }
   0xf   : > { %v341_v5 = vshrl.u32 %v340_v2, 7  ;;  %v427_v6 = vand.u32 127, %v340_v2  ;;  %464 = vperm.xlu0 %1826, %v456_v3   ;;  %1828 = vset.pattern.permute.xlu2 %v1949_v4  ;;  %s332_s25 = scalar_lea.vmem %s2505_s7, %s1741_s20  ;;  %v1499_v28 = vld [vmem:[%s2503_s5] sm:$0xff]  ;;  %v805_v43 = vld [vmem:[%s2500_s2 + $0x8] sm:$0xff]  ;;  %vm1675_vm7 = vcmask 1044484   ;;  %vm1677_vm8 = vcmask 1046534  }
  0x10   : > { %v339_v8 = vld [vmem:[%s332_s25] sm:$0x3]  ;;  %v1743_v9 = vld [vmem:[%s332_s25 + $0x2] sm:$0x3]  ;;  %v1744_v10 = vld [vmem:[%s332_s25 + $0x4] sm:$0x3]  ;;  %813 = vperm.xlu1 %1827, %v805_v43  }
  0x11   : > { %vm343_vm0 = vcmp.lt.s32.totalorder %v341_v5, 2  ;;  %vm429_vm1 = vcmp.lt.s32.totalorder %v427_v6, 2  ;;  %v1745_v14 = vld [vmem:[%s332_s25 + $0x6] sm:$0x3]  ;;  %v1748_v16 = vld [vmem:[%s332_s25 + $0xc] sm:$0x3] }
  0x12   : > { %v344_v11 = vsel %vm343_vm0, %v339_v8, %v2008_v0  ;;  %v354_v12 = vsel %vm343_vm0, %v1743_v9, %v2008_v0  ;;  %v365_v13 = vsel %vm343_vm0, %v1744_v10, %v2008_v0  ;;  %v430_v15 = vsel %vm429_vm1, %v425_v7, %v2008_v0  ;;  %v1749_v17 = vld [vmem:[%s332_s25 + $0xe] sm:$0x3]  ;;  %v1746_v19 = vld [vmem:[%s332_s25 + $0x8] sm:$0x3]  ;;  %v1747_v20 = vld [vmem:[%s332_s25 + $0xa] sm:$0x3] }
  0x13   : > { %489 = vmatpush.msra.mxu0 %v344_v11  ;;  %512 = vmatpush.msra.mxu1 %v354_v12  ;;  %v376_v18 = vsel %vm343_vm0, %v1745_v14, %v2008_v0  ;;  %v409_v22 = vsel %vm343_vm0, %v1748_v16, %v2008_v0  ;;  %v420_v23 = vsel %vm343_vm0, %v1749_v17, %v2008_v0  ;;  %v804_v62 = vld [vmem:[%s2500_s2] sm:$0xff]  ;;  %vm1679_vm9 = vcmask 1045508  }
  0x14   : > { %535 = vmatpush.msra.mxu2 %v365_v13  ;;  %558 = vmatpush.msra.mxu3 %v376_v18  ;;  %v387_v24 = vsel %vm343_vm0, %v1746_v19, %v2008_v0  ;;  %v398_v25 = vsel %vm343_vm0, %v1747_v20, %v2008_v0  ;;  %v440_v27 = vsel %vm429_vm1, %v1750_v26, %v2008_v0  ;;  %vm1681_vm10 = vcmask 1043456  }
  0x15   : > { %1751 = vmatmul.msk.f32.vlgmr.msra.gmra.mxu0 %vm467_vm2, %v430_v15  ;;  %1753 = vmatmul.msk.f32.vlgmr.msra.gmra.mxu1 %vm467_vm2, %v430_v15 }
  0x16   : > { %1755 = vmatmul.msk.f32.vlgmr.msra.gmra.mxu2 %vm467_vm2, %v430_v15  ;;  %1757 = vmatmul.msk.f32.vlgmr.msra.gmra.mxu3 %vm467_vm2, %v430_v15 }
  0x17   : > { %459 = vperm.xlu0 %1826, %v455_v21   ;;  %627 = vmatpush.msrb.mxu2 %v409_v22 }
  0x18   : > { %650 = vmatpush.msrb.mxu3 %v420_v23  ;;  %581 = vmatpush.msrb.mxu0 %v387_v24 }
  0x19   : > { %604 = vmatpush.msrb.mxu1 %v398_v25  ;;  %808 = vperm.xlu1 %1827, %v804_v62  }
  0x1d   : > { %1752 = vmatmul.msk.f32.gmra.mxu0 %vm467_vm2, %v440_v27  ;;  %1754 = vmatmul.msk.f32.gmra.mxu1 %vm467_vm2, %v440_v27 }
  0x1e   : > { %1756 = vmatmul.msk.f32.gmra.mxu2 %vm467_vm2, %v440_v27  ;;  %1758 = vmatmul.msk.f32.gmra.mxu3 %vm467_vm2, %v440_v27 }
  0x1f   : > { %1503 = vperm.xlu0 %1826, %v1499_v28  }
  0x25   : > { %1759 = vmatmul.msk.f32.vlgmr.msrb.gmra.mxu0 %vm467_vm2, %v430_v15  ;;  %1761 = vmatmul.msk.f32.vlgmr.msrb.gmra.mxu1 %vm467_vm2, %v430_v15 }
  0x26   : > { %1763 = vmatmul.msk.f32.vlgmr.msrb.gmra.mxu2 %vm467_vm2, %v430_v15  ;;  %1765 = vmatmul.msk.f32.vlgmr.msrb.gmra.mxu3 %vm467_vm2, %v430_v15 }
  0x2d   : > { %1760 = vmatmul.msk.f32.gmra.mxu0 %vm467_vm2, %v440_v27  ;;  %1762 = vmatmul.msk.f32.gmra.mxu1 %vm467_vm2, %v440_v27 }
  0x2e   : > { %1764 = vmatmul.msk.f32.gmra.mxu2 %vm467_vm2, %v440_v27  ;;  %1766 = vmatmul.msk.f32.gmra.mxu3 %vm467_vm2, %v440_v27 }
  0x81   : > { %v2078_v29 = vpop.permute.xlu0 %464 }
  0x89   : > { %v2080_v30 = vpop.permute.xlu0 %459 }
  0x92   : > { %v491_v31 = vpop.f32.mrf.mxu0  ;;  %v514_v32 = vpop.f32.mrf.mxu1 }
  0x93   : > { %v492_v33 = vadd.f32 %v491_v31, %v2080_v30  ;;  %v515_v34 = vadd.f32 %v514_v32, %v2080_v30 }
  0x95   : > { %v674_v35 = vmul.f32 0.044715, %v492_v33  ;;  %v675_v36 = vmul.f32 0.044715, %v515_v34  ;;  %v658_v25 = vmul.f32 0.5, %v492_v33  ;;  %v659_v26 = vmul.f32 0.5, %v515_v34 }
  0x97   : > { %v690_v37 = vmul.f32 %v674_v35, %v492_v33  ;;  %v691_v38 = vmul.f32 %v675_v36, %v515_v34 }
  0x99   : > { %v537_v39 = vpop.f32.mrf.mxu2  ;;  %v560_v40 = vpop.f32.mrf.mxu3  ;;  %v706_v41 = vmul.f32 %v690_v37, %v492_v33  ;;  %v707_v42 = vmul.f32 %v691_v38, %v515_v34 }
  0x9a   : > { %v538_v44 = vadd.f32 %v537_v39, %v2080_v30  ;;  %v2089_v45 = vadd.f32 %v560_v40, %v2080_v30  ;;  %v494_v46 = vpop.f32.mrf.mxu0  ;;  %v517_v47 = vpop.f32.mrf.mxu1 }
  0x9b   : > { %v495_v48 = vadd.f32 %v494_v46, %v2078_v29  ;;  %v518_v49 = vadd.f32 %v517_v47, %v2078_v29  ;;  %v722_v50 = vadd.f32 %v706_v41, %v492_v33  ;;  %v723_v51 = vadd.f32 %v707_v42, %v515_v34 }
  0x9c   : > { %v676_v52 = vmul.f32 0.044715, %v538_v44  ;;  %v677_v53 = vmul.f32 0.044715, %v2089_v45  ;;  %v2109_v35 = vmul.f32 0.5, %v538_v44 }
  0x9d   : > { %v682_v54 = vmul.f32 0.044715, %v495_v48  ;;  %v683_v55 = vmul.f32 0.044715, %v518_v49  ;;  %v738_v56 = vmul.f32 0.7978846, %v722_v50 }
  0x9e   : > { %v739_v57 = vmul.f32 0.7978846, %v723_v51  ;;  %v692_v58 = vmul.f32 %v676_v52, %v538_v44  ;;  %v693_v59 = vmul.f32 %v677_v53, %v2089_v45  ;;  %v666_v39 = vmul.f32 0.5, %v495_v48 }
  0x9f   : > { %v698_v60 = vmul.f32 %v682_v54, %v495_v48  ;;  %v699_v61 = vmul.f32 %v683_v55, %v518_v49  ;;  %1829 = vtanh.f32 %v738_v56  ;;  %v667_v40 = vmul.f32 0.5, %v518_v49 }
  0xa0   : > { %v708_v63 = vmul.f32 %v692_v58, %v538_v44  ;;  %v709_v1 = vmul.f32 %v693_v59, %v2089_v45  ;;  %1831 = vtanh.f32 %v739_v57 }
  0xa1   : > { %v714_v2 = vmul.f32 %v698_v60, %v495_v48  ;;  %v715_v3 = vmul.f32 %v699_v61, %v518_v49  ;;  %v540_v4 = vpop.f32.mrf.mxu2  ;;  %v563_v5 = vpop.f32.mrf.mxu3 }
  0xa2   : > { %v541_v6 = vadd.f32 %v540_v4, %v2078_v29  ;;  %v564_v7 = vadd.f32 %v563_v5, %v2078_v29  ;;  %v583_v8 = vpop.f32.mrf.mxu0  ;;  %v606_v9 = vpop.f32.mrf.mxu1  ;;  %v724_v10 = vadd.f32 %v708_v63, %v538_v44  ;;  %v725_v14 = vadd.f32 %v709_v1, %v2089_v45 }
  0xa3   : > { %v2102_v11 = vadd.f32 %v583_v8, %v2080_v30  ;;  %v730_v12 = vadd.f32 %v714_v2, %v495_v48  ;;  %v731_v13 = vadd.f32 %v715_v3, %v518_v49  ;;  %v2107_v18 = vadd.f32 %v606_v9, %v2080_v30 }
  0xa4   : > { %v684_v15 = vmul.f32 0.044715, %v541_v6  ;;  %v685_v16 = vmul.f32 0.044715, %v564_v7  ;;  %v740_v23 = vmul.f32 0.7978846, %v724_v10 }
  0xa5   : > { %v678_v17 = vmul.f32 0.044715, %v2102_v11  ;;  %v746_v19 = vmul.f32 0.7978846, %v730_v12  ;;  %v747_v22 = vmul.f32 0.7978846, %v731_v13  ;;  %v1830_v24 = vpop.eup %1829 }
  0xa6   : > { %v700_v20 = vmul.f32 %v684_v15, %v541_v6  ;;  %v701_v21 = vmul.f32 %v685_v16, %v564_v7  ;;  %v741_v27 = vmul.f32 0.7978846, %v725_v14  ;;  %v1832_v28 = vpop.eup %1831  ;;  %v679_v36 = vmul.f32 0.044715, %v2107_v18 }
  0xa7   : > { %1833 = vtanh.f32 %v746_v19  ;;  %v694_v41 = vmul.f32 %v678_v17, %v2102_v11  ;;  %v2113_v33 = vmul.f32 0.5, %v541_v6  ;;  %v2115_v46 = vmul.f32 0.5, %v564_v7  ;;  %v2150_v19 = vld [vmem:[%s2499_s1] sm:$0xff] }
  0xa8   : > { %v716_v31 = vmul.f32 %v700_v20, %v541_v6  ;;  %v717_v32 = vmul.f32 %v701_v21, %v564_v7  ;;  %1835 = vtanh.f32 %v747_v22  ;;  %v770_v48 = vadd.f32 1.0, %v1830_v24 }
  0xa9   : > { %v629_v37 = vpop.f32.mrf.mxu2  ;;  %v652_v38 = vpop.f32.mrf.mxu3  ;;  %1837 = vtanh.f32 %v740_v23  ;;  %v771_v49 = vadd.f32 1.0, %v1832_v28  ;;  %v710_v52 = vmul.f32 %v694_v41, %v2102_v11  ;;  %v695_v57 = vmul.f32 %v679_v36, %v2107_v18 }
  0xaa   : > { %v586_v42 = vpop.f32.mrf.mxu0  ;;  %v609_v43 = vpop.f32.mrf.mxu1  ;;  %v732_v34 = vadd.f32 %v716_v31, %v541_v6  ;;  %v733_v50 = vadd.f32 %v717_v32, %v564_v7  ;;  %1839 = vtanh.f32 %v741_v27  ;;  %v2128_v59 = vadd.f32 %v629_v37, %v2080_v30  ;;  %v1500_v37 = vld [vmem:[%s2503_s5 + $0x8] sm:$0xff] }
  0xab   : > { %v2118_v44 = vadd.f32 %v586_v42, %v2078_v29  ;;  %v2121_v47 = vadd.f32 %v609_v43, %v2078_v29  ;;  %v2131_v60 = vadd.f32 %v652_v38, %v2080_v30  ;;  %v786_v4 = vmul.f32 %v770_v48, %v658_v25  ;;  %1508 = vperm.xlu1 %1827, %v1500_v37  }
  0xac   : > { %v748_v51 = vmul.f32 0.7978846, %v732_v34  ;;  %v749_v56 = vmul.f32 0.7978846, %v733_v50  ;;  %v726_v5 = vadd.f32 %v710_v52, %v2102_v11  ;;  %v711_v6 = vmul.f32 %v695_v57, %v2107_v18 }
  0xad   : > { %v1834_v53 = vpop.eup %1833  ;;  %v686_v54 = vmul.f32 0.044715, %v2118_v44  ;;  %v687_v55 = vmul.f32 0.044715, %v2121_v47  ;;  %v787_v13 = vmul.f32 %v771_v49, %v659_v26  ;;  %v680_v14 = vmul.f32 0.044715, %v2128_v59 }
  0xae   : > { %v1836_v58 = vpop.eup %1835  ;;  %v778_v61 = vadd.f32 1.0, %v1834_v53  ;;  %1841 = vtanh.f32 %v748_v51  ;;  %v681_v15 = vmul.f32 0.044715, %v2131_v60  ;;  %v742_v22 = vmul.f32 0.7978846, %v726_v5  ;;  %v2178_v53 = vld [vmem:[%s2499_s1 + $0x8] sm:$0xff] }
  0xaf   : > { %v702_v62 = vmul.f32 %v686_v54, %v2118_v44  ;;  %v703_v63 = vmul.f32 %v687_v55, %v2121_v47  ;;  %v779_v1 = vadd.f32 1.0, %v1836_v58  ;;  %1843 = vtanh.f32 %v749_v56  ;;  %v1838_v2 = vpop.eup %1837 }
  0xb0   : > { %v794_v3 = vmul.f32 %v778_v61, %v666_v39  ;;  %v1840_v7 = vpop.eup %1839  ;;  %v727_v23 = vadd.f32 %v711_v6, %v2107_v18  ;;  %v772_v26 = vadd.f32 1.0, %v1838_v2  ;;  %1845 = vtanh.f32 %v742_v22 }
  0xb1   : > { %v718_v8 = vmul.f32 %v702_v62, %v2118_v44  ;;  %v719_v30 = vmul.f32 %v703_v63, %v2121_v47  ;;  %v632_v9 = vpop.f32.mrf.mxu2  ;;  %v655_v10 = vpop.f32.mrf.mxu3  ;;  %v795_v12 = vmul.f32 %v779_v1, %v667_v40  ;;  %v773_v27 = vadd.f32 1.0, %v1840_v7 }
  0xb2   : > { %v2142_v16 = vadd.f32 %v632_v9, %v2078_v29  ;;  %v2145_v17 = vadd.f32 %v655_v10, %v2078_v29  ;;  %837 = vmatpush.msra.mxu0 %v794_v3  ;;  %v743_v41 = vmul.f32 0.7978846, %v727_v23  ;;  %v661_v43 = vmul.f32 0.5, %v2089_v45 }
  0xb3   : > { %860 = vmatpush.msra.mxu1 %v795_v12  ;;  %v734_v20 = vadd.f32 %v718_v8, %v2118_v44  ;;  %v735_v21 = vadd.f32 %v719_v30, %v2121_v47  ;;  %v696_v34 = vmul.f32 %v680_v14, %v2128_v59  ;;  %v788_v51 = vmul.f32 %v772_v26, %v2109_v35 }
  0xb4   : > { %v1842_v24 = vpop.eup %1841  ;;  %v688_v25 = vmul.f32 0.044715, %v2142_v16  ;;  %v689_v29 = vmul.f32 0.044715, %v2145_v17  ;;  %838 = vmatpush.msra.mxu0 %v786_v4  ;;  %v789_v45 = vmul.f32 %v773_v27, %v661_v43  ;;  %v670_v2 = vmul.f32 0.5, %v2118_v44 }
  0xb5   : > { %v1844_v28 = vpop.eup %1843  ;;  %861 = vmatpush.msra.mxu1 %v787_v13  ;;  %1767 = vmatmul.msk.f32.vlgmr.msra.gmra.mxu0 %vm816_vm3, %v2150_v19  ;;  %v780_v31 = vadd.f32 1.0, %v1842_v24  ;;  %v750_v32 = vmul.f32 0.7978846, %v734_v20  ;;  %v751_v36 = vmul.f32 0.7978846, %v735_v21  ;;  %v712_v52 = vmul.f32 %v696_v34, %v2128_v59 }
  0xb6   : > { %v704_v38 = vmul.f32 %v688_v25, %v2142_v16  ;;  %v705_v39 = vmul.f32 %v689_v29, %v2145_v17  ;;  %1769 = vmatmul.msk.f32.vlgmr.msra.gmra.mxu1 %vm816_vm3, %v2150_v19  ;;  %v781_v40 = vadd.f32 1.0, %v1844_v28  ;;  %v1846_v55 = vpop.eup %1845  ;;  %v671_v6 = vmul.f32 0.5, %v2121_v47 }
  0xb7   : > { %v796_v42 = vmul.f32 %v780_v31, %v2113_v33  ;;  %1847 = vtanh.f32 %v750_v32  ;;  %v697_v33 = vmul.f32 %v681_v15, %v2131_v60  ;;  %v728_v35 = vadd.f32 %v712_v52, %v2128_v59 }
  0xb8   : > { %v720_v50 = vmul.f32 %v704_v38, %v2142_v16  ;;  %v721_v48 = vmul.f32 %v705_v39, %v2145_v17  ;;  %v797_v49 = vmul.f32 %v781_v40, %v2115_v46  ;;  %1849 = vtanh.f32 %v751_v36 }
  0xb9   : > { %883 = vmatpush.msra.mxu2 %v796_v42  ;;  %1851 = vtanh.f32 %v743_v41  ;;  %v713_v56 = vmul.f32 %v697_v33, %v2131_v60  ;;  %v744_v62 = vmul.f32 0.7978846, %v728_v35  ;;  %v774_v4 = vadd.f32 1.0, %v1846_v55 }
  0xba   : > { %906 = vmatpush.msra.mxu3 %v797_v49  ;;  %v736_v54 = vadd.f32 %v720_v50, %v2142_v16  ;;  %v737_v46 = vadd.f32 %v721_v48, %v2145_v17  ;;  %v662_v9 = vmul.f32 0.5, %v2102_v11  ;;  %v663_v13 = vmul.f32 0.5, %v2107_v18 }
  0xbb   : > { %884 = vmatpush.msra.mxu2 %v788_v51  ;;  %v729_v63 = vadd.f32 %v713_v56, %v2131_v60  ;;  %v672_v11 = vmul.f32 0.5, %v2142_v16  ;;  %v673_v18 = vmul.f32 0.5, %v2145_v17  ;;  %v664_v25 = vmul.f32 0.5, %v2128_v59  ;;  %v2221_v59 = vpop.permute.xlu1 %813 }
  0xbc   : > { %907 = vmatpush.msra.mxu3 %v789_v45  ;;  %1771 = vmatmul.msk.f32.vlgmr.msra.gmra.mxu2 %vm816_vm3, %v2150_v19  ;;  %v752_v57 = vmul.f32 0.7978846, %v736_v54  ;;  %v753_v58 = vmul.f32 0.7978846, %v737_v46  ;;  %v790_v44 = vmul.f32 %v774_v4, %v662_v9  ;;  %v665_v27 = vmul.f32 0.5, %v2131_v60 }
  0xbd   : > { %v1848_v61 = vpop.eup %1847  ;;  %1773 = vmatmul.msk.f32.vlgmr.msra.gmra.mxu3 %vm816_vm3, %v2150_v19  ;;  %1768 = vmatmul.msk.f32.gmra.mxu0 %vm816_vm3, %v2178_v53  ;;  %v745_v8 = vmul.f32 0.7978846, %v729_v63 }
  0xbe   : > { %v1850_v1 = vpop.eup %1849  ;;  %1770 = vmatmul.msk.f32.gmra.mxu1 %vm816_vm3, %v2178_v53  ;;  %v782_v3 = vadd.f32 1.0, %v1848_v61  ;;  %1853 = vtanh.f32 %v752_v57 }
  0xbf   : > { %v1852_v5 = vpop.eup %1851  ;;  %v783_v7 = vadd.f32 1.0, %v1850_v1  ;;  %1855 = vtanh.f32 %v753_v58 }
  0xc0   : > { %v798_v30 = vmul.f32 %v782_v3, %v670_v2  ;;  %v775_v10 = vadd.f32 1.0, %v1852_v5  ;;  %1857 = vtanh.f32 %v744_v62 }
  0xc1   : > { %v799_v12 = vmul.f32 %v783_v7, %v671_v6  ;;  %1859 = vtanh.f32 %v745_v8 }
  0xc2   : > { %929 = vmatpush.msrb.mxu0 %v798_v30  ;;  %v791_v14 = vmul.f32 %v775_v10, %v663_v13 }
  0xc3   : > { %952 = vmatpush.msrb.mxu1 %v799_v12  ;;  %v2223_v60 = vpop.permute.xlu1 %808 }
  0xc4   : > { %v1854_v15 = vpop.eup %1853  ;;  %1772 = vmatmul.msk.f32.gmra.mxu2 %vm816_vm3, %v2178_v53  ;;  %930 = vmatpush.msrb.mxu0 %v790_v44 }
  0xc5   : > { %v1856_v47 = vpop.eup %1855  ;;  %1774 = vmatmul.msk.f32.gmra.mxu3 %vm816_vm3, %v2178_v53  ;;  %953 = vmatpush.msrb.mxu1 %v791_v14  ;;  %v784_v20 = vadd.f32 1.0, %v1854_v15 }
  0xc6   : > { %v1858_v21 = vpop.eup %1857  ;;  %1775 = vmatmul.msk.f32.vlgmr.msrb.gmra.mxu0 %vm816_vm3, %v2150_v19  ;;  %1777 = vmatmul.msk.f32.vlgmr.msrb.gmra.mxu1 %vm816_vm3, %v2150_v19  ;;  %v785_v22 = vadd.f32 1.0, %v1856_v47 }
  0xc7   : > { %v1860_v23 = vpop.eup %1859  ;;  %v800_v24 = vmul.f32 %v784_v20, %v672_v11  ;;  %v776_v29 = vadd.f32 1.0, %v1858_v21 }
  0xc8   : > { %v801_v26 = vmul.f32 %v785_v22, %v673_v18  ;;  %v777_v16 = vadd.f32 1.0, %v1860_v23 }
  0xc9   : > { %975 = vmatpush.msrb.mxu2 %v800_v24  ;;  %v792_v28 = vmul.f32 %v776_v29, %v664_v25 }
  0xca   : > { %998 = vmatpush.msrb.mxu3 %v801_v26  ;;  %v793_v31 = vmul.f32 %v777_v16, %v665_v27 }
  0xcb   : > { %976 = vmatpush.msrb.mxu2 %v792_v28 }
  0xcc   : > { %999 = vmatpush.msrb.mxu3 %v793_v31  ;;  %1779 = vmatmul.msk.f32.vlgmr.msrb.gmra.mxu2 %vm816_vm3, %v2150_v19 }
  0xcd   : > { %1781 = vmatmul.msk.f32.vlgmr.msrb.gmra.mxu3 %vm816_vm3, %v2150_v19 }
  0xce   : > { %1776 = vmatmul.msk.f32.gmra.mxu0 %vm816_vm3, %v2178_v53  ;;  %1778 = vmatmul.msk.f32.gmra.mxu1 %vm816_vm3, %v2178_v53 }
  0xd4   : > { %1780 = vmatmul.msk.f32.gmra.mxu2 %vm816_vm3, %v2178_v53 }
  0xd5   : > { %1782 = vmatmul.msk.f32.gmra.mxu3 %vm816_vm3, %v2178_v53 }
 0x132   : > { %v840_v17 = vpop.f32.mrf.mxu0 }
 0x133   : > { %v863_v32 = vpop.f32.mrf.mxu1  ;;  %v841_v19 = vadd.f32 %v840_v17, %v2223_v60 }
 0x134   : > { %v864_v36 = vadd.f32 %v863_v32, %v2223_v60 }
 0x135   : > { %v1023_v37 = vmul.f32 0.044715, %v841_v19  ;;  %v1007_v18 = vmul.f32 0.5, %v841_v19 }
 0x136   : > { %v1024_v38 = vmul.f32 0.044715, %v864_v36  ;;  %v1008_v29 = vmul.f32 0.5, %v864_v36 }
 0x137   : > { %v1039_v39 = vmul.f32 %v1023_v37, %v841_v19 }
 0x138   : > { %v1040_v40 = vmul.f32 %v1024_v38, %v864_v36 }
 0x139   : > { %v1055_v41 = vmul.f32 %v1039_v39, %v841_v19 }
 0x13a   : > { %v843_v42 = vpop.f32.mrf.mxu0  ;;  %v1056_v43 = vmul.f32 %v1040_v40, %v864_v36 }
 0x13b   : > { %v844_v34 = vadd.f32 %v843_v42, %v2221_v59  ;;  %v866_v50 = vpop.f32.mrf.mxu1  ;;  %v1071_v48 = vadd.f32 %v1055_v41, %v841_v19 }
 0x13c   : > { %v867_v49 = vadd.f32 %v866_v50, %v2221_v59  ;;  %v1072_v51 = vadd.f32 %v1056_v43, %v864_v36 }
 0x13d   : > { %v1031_v52 = vmul.f32 0.044715, %v844_v34  ;;  %v1087_v33 = vmul.f32 0.7978846, %v1071_v48  ;;  %v1015_v25 = vmul.f32 0.5, %v844_v34 }
 0x13e   : > { %v1032_v45 = vmul.f32 0.044715, %v867_v49  ;;  %v1088_v53 = vmul.f32 0.7978846, %v1072_v51  ;;  %v1016_v17 = vmul.f32 0.5, %v867_v49 }
 0x13f   : > { %v1047_v54 = vmul.f32 %v1031_v52, %v844_v34  ;;  %v886_v46 = vpop.f32.mrf.mxu2  ;;  %1861 = vtanh.f32 %v1087_v33 }
 0x140   : > { %v1048_v55 = vmul.f32 %v1032_v45, %v867_v49  ;;  %v2230_v35 = vadd.f32 %v886_v46, %v2223_v60  ;;  %v909_v56 = vpop.f32.mrf.mxu3  ;;  %1863 = vtanh.f32 %v1088_v53 }
 0x141   : > { %v1063_v57 = vmul.f32 %v1047_v54, %v844_v34  ;;  %v2233_v58 = vadd.f32 %v909_v56, %v2223_v60 }
 0x142   : > { %v1064_v61 = vmul.f32 %v1048_v55, %v867_v49  ;;  %v1025_v62 = vmul.f32 0.044715, %v2230_v35 }
 0x143   : > { %v1026_v63 = vmul.f32 0.044715, %v2233_v58  ;;  %v932_v1 = vpop.f32.mrf.mxu0  ;;  %v955_v2 = vpop.f32.mrf.mxu1  ;;  %v1079_v3 = vadd.f32 %v1063_v57, %v844_v34 }
 0x144   : > { %v2238_v4 = vadd.f32 %v932_v1, %v2223_v60  ;;  %v1080_v5 = vadd.f32 %v1064_v61, %v867_v49  ;;  %v1041_v6 = vmul.f32 %v1025_v62, %v2230_v35  ;;  %v2245_v44 = vadd.f32 %v955_v2, %v2223_v60 }
 0x145   : > { %v1862_v7 = vpop.eup %1861  ;;  %v1095_v8 = vmul.f32 0.7978846, %v1079_v3  ;;  %v1042_v30 = vmul.f32 %v1026_v63, %v2233_v58 }
 0x146   : > { %v1864_v9 = vpop.eup %1863  ;;  %v1027_v10 = vmul.f32 0.044715, %v2238_v4  ;;  %v1096_v12 = vmul.f32 0.7978846, %v1080_v5  ;;  %v1057_v13 = vmul.f32 %v1041_v6, %v2230_v35  ;;  %v1119_v20 = vadd.f32 1.0, %v1862_v7  ;;  %v2289_v6 = vld [vmem:[%s2501_s3] sm:$0xff] }
 0x147   : > { %v889_v14 = vpop.f32.mrf.mxu2  ;;  %1865 = vtanh.f32 %v1095_v8  ;;  %v1058_v15 = vmul.f32 %v1042_v30, %v2233_v58  ;;  %v1120_v22 = vadd.f32 1.0, %v1864_v9  ;;  %v1028_v27 = vmul.f32 0.044715, %v2245_v44 }
 0x148   : > { %v2249_v47 = vadd.f32 %v889_v14, %v2221_v59  ;;  %v912_v11 = vpop.f32.mrf.mxu3  ;;  %1867 = vtanh.f32 %v1096_v12  ;;  %v1073_v23 = vadd.f32 %v1057_v13, %v2230_v35  ;;  %v1043_v26 = vmul.f32 %v1027_v10, %v2238_v4  ;;  %v1153_v14 = vld [vmem:[%s2502_s4] sm:$0xff] }
 0x149   : > { %v2252_v21 = vadd.f32 %v912_v11, %v2221_v59  ;;  %v1074_v32 = vadd.f32 %v1058_v15, %v2233_v58  ;;  %v1135_v36 = vmul.f32 %v1119_v20, %v1007_v18  ;;  %v1136_v41 = vmul.f32 %v1120_v22, %v1008_v29  ;;  %1157 = vperm.xlu2 %1828, %v1153_v14  }
 0x14a   : > { %v1033_v24 = vmul.f32 0.044715, %v2249_v47  ;;  %v1089_v42 = vmul.f32 0.7978846, %v1073_v23  ;;  %v1059_v43 = vmul.f32 %v1043_v26, %v2238_v4  ;;  %v1044_v54 = vmul.f32 %v1028_v27, %v2245_v44 }
 0x14b   : > { %v1034_v16 = vmul.f32 0.044715, %v2252_v21  ;;  %v935_v28 = vpop.f32.mrf.mxu0  ;;  %v958_v31 = vpop.f32.mrf.mxu1  ;;  %v1090_v53 = vmul.f32 0.7978846, %v1074_v32  ;;  %v1012_v14 = vmul.f32 0.5, %v2245_v44 }
 0x14c   : > { %v1049_v19 = vmul.f32 %v1033_v24, %v2249_v47  ;;  %v2262_v37 = vadd.f32 %v935_v28, %v2221_v59  ;;  %v2265_v38 = vadd.f32 %v958_v31, %v2221_v59  ;;  %1869 = vtanh.f32 %v1089_v42 }
 0x14d   : > { %v1866_v39 = vpop.eup %1865  ;;  %v1050_v40 = vmul.f32 %v1034_v16, %v2252_v21  ;;  %v1075_v7 = vadd.f32 %v1059_v43, %v2238_v4  ;;  %v1060_v9 = vmul.f32 %v1044_v54, %v2245_v44  ;;  %1871 = vtanh.f32 %v1090_v53 }
 0x14e   : > { %v1868_v34 = vpop.eup %1867  ;;  %v1065_v50 = vmul.f32 %v1049_v19, %v2249_v47  ;;  %v1035_v48 = vmul.f32 0.044715, %v2262_v37  ;;  %v1036_v49 = vmul.f32 0.044715, %v2265_v38  ;;  %v1127_v51 = vadd.f32 1.0, %v1866_v39  ;;  %v2319_v19 = vld [vmem:[%s2501_s3 + $0x8] sm:$0xff] }
 0x14f   : > { %v1066_v52 = vmul.f32 %v1050_v40, %v2252_v21  ;;  %v978_v33 = vpop.f32.mrf.mxu2  ;;  %v1128_v45 = vadd.f32 1.0, %v1868_v34  ;;  %v1091_v15 = vmul.f32 0.7978846, %v1075_v7  ;;  %v1076_v11 = vadd.f32 %v1060_v9, %v2245_v44 }
 0x150   : > { %v1051_v46 = vmul.f32 %v1035_v48, %v2262_v37  ;;  %v1052_v55 = vmul.f32 %v1036_v49, %v2265_v38  ;;  %v2277_v56 = vadd.f32 %v978_v33, %v2223_v60  ;;  %v1001_v57 = vpop.f32.mrf.mxu3  ;;  %v1143_v61 = vmul.f32 %v1127_v51, %v1015_v25 }
 0x151   : > { %v2280_v62 = vadd.f32 %v1001_v57, %v2223_v60  ;;  %v1144_v63 = vmul.f32 %v1128_v45, %v1016_v17  ;;  %v1081_v1 = vadd.f32 %v1065_v50, %v2249_v47  ;;  %v1082_v2 = vadd.f32 %v1066_v52, %v2252_v21 }
 0x152   : > { %v1067_v3 = vmul.f32 %v1051_v46, %v2262_v37  ;;  %v1068_v5 = vmul.f32 %v1052_v55, %v2265_v38  ;;  %1185 = vmatpush.msra.mxu0 %v1143_v61  ;;  %v1029_v60 = vmul.f32 0.044715, %v2277_v56  ;;  %v1092_v23 = vmul.f32 0.7978846, %v1076_v11  ;;  %v1870_v25 = vpop.eup %1869  ;;  %v1583_v11 = vld [vmem:[#allocation12] sm:$0x1] }
 0x153   : > { %1208 = vmatpush.msra.mxu1 %v1144_v63  ;;  %v1097_v8 = vmul.f32 0.7978846, %v1081_v1  ;;  %v1098_v30 = vmul.f32 0.7978846, %v1082_v2  ;;  %v1030_v10 = vmul.f32 0.044715, %v2280_v62  ;;  %v1872_v17 = vpop.eup %1871 }
 0x154   : > { %1186 = vmatpush.msra.mxu0 %v1135_v36  ;;  %v1083_v12 = vadd.f32 %v1067_v3, %v2262_v37  ;;  %v1084_v13 = vadd.f32 %v1068_v5, %v2265_v38  ;;  %v1045_v24 = vmul.f32 %v1029_v60, %v2277_v56  ;;  %v1009_v28 = vmul.f32 0.5, %v2230_v35 }
 0x155   : > { %1209 = vmatpush.msra.mxu1 %v1136_v41  ;;  %1783 = vmatmul.msk.f32.vlgmr.msra.gmra.mxu0 %vm816_vm3, %v2289_v6  ;;  %1873 = vtanh.f32 %v1097_v8  ;;  %v1046_v27 = vmul.f32 %v1030_v10, %v2280_v62  ;;  %v1010_v36 = vmul.f32 0.5, %v2233_v58  ;;  %v1017_v35 = vmul.f32 0.5, %v2249_v47  ;;  %v1154_v58 = vld [vmem:[%s2502_s4 + $0x8] sm:$0xff] }
 0x156   : > { %1785 = vmatmul.msk.f32.vlgmr.msra.gmra.mxu1 %vm816_vm3, %v2289_v6  ;;  %1875 = vtanh.f32 %v1098_v30  ;;  %v1099_v20 = vmul.f32 0.7978846, %v1083_v12  ;;  %v1100_v22 = vmul.f32 0.7978846, %v1084_v13  ;;  %v1061_v31 = vmul.f32 %v1045_v24, %v2277_v56  ;;  %1162 = vperm.xlu2 %1828, %v1154_v58  }
 0x157   : > { %v981_v18 = vpop.f32.mrf.mxu2  ;;  %1877 = vtanh.f32 %v1091_v15  ;;  %v1062_v39 = vmul.f32 %v1046_v27, %v2280_v62  ;;  %v1018_v41 = vmul.f32 0.5, %v2252_v21  ;;  %v1121_v48 = vadd.f32 1.0, %v1870_v25 }
 0x158   : > { %v2307_v29 = vadd.f32 %v981_v18, %v2221_v59  ;;  %v1004_v26 = vpop.f32.mrf.mxu3  ;;  %1879 = vtanh.f32 %v1099_v20  ;;  %v1077_v42 = vadd.f32 %v1061_v31, %v2277_v56  ;;  %v1122_v21 = vadd.f32 1.0, %v1872_v17 }
 0x159   : > { %v2311_v16 = vadd.f32 %v1004_v26, %v2221_v59  ;;  %1881 = vtanh.f32 %v1100_v22  ;;  %v1078_v49 = vadd.f32 %v1062_v39, %v2280_v62  ;;  %v1019_v33 = vmul.f32 0.5, %v2262_v37 }
 0x15a   : > { %v1037_v32 = vmul.f32 0.044715, %v2307_v29  ;;  %1883 = vtanh.f32 %v1092_v23  ;;  %v1020_v46 = vmul.f32 0.5, %v2265_v38  ;;  %v1093_v55 = vmul.f32 0.7978846, %v1077_v42 }
 0x15b   : > { %v1874_v59 = vpop.eup %1873  ;;  %v1038_v40 = vmul.f32 0.044715, %v2311_v16  ;;  %v1094_v2 = vmul.f32 0.7978846, %v1078_v49  ;;  %v1137_v37 = vmul.f32 %v1121_v48, %v1009_v28  ;;  %v1138_v8 = vmul.f32 %v1122_v21, %v1010_v36 }
 0x15c   : > { %v1876_v43 = vpop.eup %1875  ;;  %v1053_v34 = vmul.f32 %v1037_v32, %v2307_v29  ;;  %v1129_v50 = vadd.f32 1.0, %v1874_v59  ;;  %v1011_v12 = vmul.f32 0.5, %v2238_v4  ;;  %1885 = vtanh.f32 %v1093_v55 }
 0x15d   : > { %v1878_v51 = vpop.eup %1877  ;;  %v1054_v52 = vmul.f32 %v1038_v40, %v2311_v16  ;;  %1784 = vmatmul.msk.f32.gmra.mxu0 %vm816_vm3, %v2319_v19  ;;  %v1130_v47 = vadd.f32 1.0, %v1876_v43  ;;  %1887 = vtanh.f32 %v1094_v2  ;;  %v1021_v24 = vmul.f32 0.5, %v2307_v29 }
 0x15e   : > { %v1880_v45 = vpop.eup %1879  ;;  %v1069_v53 = vmul.f32 %v1053_v34, %v2307_v29  ;;  %1786 = vmatmul.msk.f32.gmra.mxu1 %vm816_vm3, %v2319_v19  ;;  %v1145_v54 = vmul.f32 %v1129_v50, %v1017_v35  ;;  %v1123_v7 = vadd.f32 1.0, %v1878_v51  ;;  %1586 = vperm.xlu2 %1828, %v1583_v11   ;;  %v1022_v27 = vmul.f32 0.5, %v2311_v16 }
 0x15f   : > { %v1882_v57 = vpop.eup %1881  ;;  %v1070_v61 = vmul.f32 %v1054_v52, %v2311_v16  ;;  %v1146_v63 = vmul.f32 %v1130_v47, %v1018_v41  ;;  %v1131_v1 = vadd.f32 1.0, %v1880_v45  ;;  %v1013_v32 = vmul.f32 0.5, %v2277_v56 }
 0x160   : > { %v1884_v3 = vpop.eup %1883  ;;  %1231 = vmatpush.msra.mxu2 %v1145_v54  ;;  %v1132_v5 = vadd.f32 1.0, %v1882_v57  ;;  %v1085_v60 = vadd.f32 %v1069_v53, %v2307_v29  ;;  %v1139_v20 = vmul.f32 %v1123_v7, %v1011_v12  ;;  %v1014_v39 = vmul.f32 0.5, %v2280_v62 }
 0x161   : > { %1254 = vmatpush.msra.mxu3 %v1146_v63  ;;  %v1147_v30 = vmul.f32 %v1131_v1, %v1019_v33  ;;  %v1124_v9 = vadd.f32 1.0, %v1884_v3  ;;  %v1086_v38 = vadd.f32 %v1070_v61, %v2311_v16 }
 0x162   : > { %1232 = vmatpush.msra.mxu2 %v1137_v37  ;;  %v1148_v10 = vmul.f32 %v1132_v5, %v1020_v46  ;;  %v1101_v13 = vmul.f32 0.7978846, %v1085_v60  ;;  %v1886_v4 = vpop.eup %1885 }
 0x163   : > { %1255 = vmatpush.msra.mxu3 %v1138_v8  ;;  %1787 = vmatmul.msk.f32.vlgmr.msra.gmra.mxu2 %vm816_vm3, %v2289_v6  ;;  %v1102_v15 = vmul.f32 0.7978846, %v1086_v38  ;;  %v1140_v18 = vmul.f32 %v1124_v9, %v1012_v14  ;;  %v1888_v44 = vpop.eup %1887  ;;  %v1125_v26 = vadd.f32 1.0, %v1886_v4 }
 0x164   : > { %1789 = vmatmul.msk.f32.vlgmr.msra.gmra.mxu3 %vm816_vm3, %v2289_v6  ;;  %1277 = vmatpush.msrb.mxu0 %v1147_v30  ;;  %1889 = vtanh.f32 %v1101_v13  ;;  %v1126_v31 = vadd.f32 1.0, %v1888_v44 }
 0x165   : > { %1300 = vmatpush.msrb.mxu1 %v1148_v10  ;;  %1891 = vtanh.f32 %v1102_v15  ;;  %v1141_v29 = vmul.f32 %v1125_v26, %v1013_v32 }
 0x166   : > { %1278 = vmatpush.msrb.mxu0 %v1139_v20  ;;  %v1142_v59 = vmul.f32 %v1126_v31, %v1014_v39 }
 0x167   : > { %1301 = vmatpush.msrb.mxu1 %v1140_v18  ;;  %1791 = vmatmul.msk.f32.vlgmr.msrb.gmra.mxu0 %vm816_vm3, %v2289_v6 }
 0x168   : > { %1793 = vmatmul.msk.f32.vlgmr.msrb.gmra.mxu1 %vm816_vm3, %v2289_v6 }
 0x16a   : > { %v1890_v22 = vpop.eup %1889 }
 0x16b   : > { %v1892_v23 = vpop.eup %1891  ;;  %1788 = vmatmul.msk.f32.gmra.mxu2 %vm816_vm3, %v2319_v19  ;;  %v1133_v25 = vadd.f32 1.0, %v1890_v22 }
 0x16c   : > { %1790 = vmatmul.msk.f32.gmra.mxu3 %vm816_vm3, %v2319_v19  ;;  %v1134_v28 = vadd.f32 1.0, %v1892_v23 }
 0x16d   : > { %v1149_v17 = vmul.f32 %v1133_v25, %v1021_v24 }
 0x16e   : > { %v1150_v36 = vmul.f32 %v1134_v28, %v1022_v27 }
 0x16f   : > { %1792 = vmatmul.msk.f32.gmra.mxu0 %vm816_vm3, %v2319_v19  ;;  %1323 = vmatpush.msrb.mxu2 %v1149_v17 }
 0x170   : > { %1794 = vmatmul.msk.f32.gmra.mxu1 %vm816_vm3, %v2319_v19  ;;  %1346 = vmatpush.msrb.mxu3 %v1150_v36 }
 0x171   : > { %1324 = vmatpush.msrb.mxu2 %v1141_v29 }
 0x172   : > { %1347 = vmatpush.msrb.mxu3 %v1142_v59 }
 0x173   : > { %1795 = vmatmul.msk.f32.vlgmr.msrb.gmra.mxu2 %vm816_vm3, %v2289_v6 }
 0x174   : > { %1797 = vmatmul.msk.f32.vlgmr.msrb.gmra.mxu3 %vm816_vm3, %v2289_v6 }
 0x17b   : > { %1796 = vmatmul.msk.f32.gmra.mxu2 %vm816_vm3, %v2319_v19 }
 0x17c   : > { %1798 = vmatmul.msk.f32.gmra.mxu3 %vm816_vm3, %v2319_v19 }
 0x1a3   : > { %v2373_v56 = vpop.permute.xlu2 %1157 }
 0x1b0   : > { %v2377_v50 = vpop.permute.xlu2 %1162 }
 0x1d2   : > { %v1188_v62 = vpop.f32.mrf.mxu0 }
 0x1d3   : > { %v1189_v16 = vadd.f32 %v1188_v62, %v2373_v56  ;;  %v1211_v40 = vpop.f32.mrf.mxu1 }
 0x1d4   : > { %v1212_v35 = vadd.f32 %v1211_v40, %v2373_v56 }
 0x1d5   : > { %v1371_v41 = vmul.f32 0.044715, %v1189_v16  ;;  %v1355_v18 = vmul.f32 0.5, %v1189_v16 }
 0x1d6   : > { %v1372_v42 = vmul.f32 0.044715, %v1212_v35  ;;  %v1356_v15 = vmul.f32 0.5, %v1212_v35 }
 0x1d7   : > { %v1387_v43 = vmul.f32 %v1371_v41, %v1189_v16 }
 0x1d8   : > { %v1388_v34 = vmul.f32 %v1372_v42, %v1212_v35 }
 0x1d9   : > { %v1403_v6 = vmul.f32 %v1387_v43, %v1189_v16 }
 0x1da   : > { %v1404_v48 = vmul.f32 %v1388_v34, %v1212_v35  ;;  %v1191_v49 = vpop.f32.mrf.mxu0 }
 0x1db   : > { %v1192_v58 = vadd.f32 %v1191_v49, %v2377_v50  ;;  %v1214_v19 = vpop.f32.mrf.mxu1  ;;  %v1419_v51 = vadd.f32 %v1403_v6, %v1189_v16 }
 0x1dc   : > { %v1420_v52 = vadd.f32 %v1404_v48, %v1212_v35  ;;  %v1215_v47 = vadd.f32 %v1214_v19, %v2377_v50 }
 0x1dd   : > { %v1379_v21 = vmul.f32 0.044715, %v1192_v58  ;;  %v1435_v54 = vmul.f32 0.7978846, %v1419_v51  ;;  %v1363_v22 = vmul.f32 0.5, %v1192_v58 }
 0x1de   : > { %v1436_v33 = vmul.f32 0.7978846, %v1420_v52  ;;  %v1380_v45 = vmul.f32 0.044715, %v1215_v47  ;;  %v1364_v23 = vmul.f32 0.5, %v1215_v47 }
 0x1df   : > { %v1395_v53 = vmul.f32 %v1379_v21, %v1192_v58 }
 0x1e0   : > { %v1396_v46 = vmul.f32 %v1380_v45, %v1215_v47  ;;  %1893 = vtanh.f32 %v1436_v33 }
 0x1e1   : > { %v1411_v55 = vmul.f32 %v1395_v53, %v1192_v58  ;;  %1895 = vtanh.f32 %v1435_v54 }
 0x1e2   : > { %v1412_v57 = vmul.f32 %v1396_v46, %v1215_v47 }
 0x1e3   : > { %v1427_v61 = vadd.f32 %v1411_v55, %v1192_v58  ;;  %v2412_v58 = vpop.permute.xlu0 %1503 }
 0x1e4   : > { %v1428_v63 = vadd.f32 %v1412_v57, %v1215_v47  ;;  %v1280_v1 = vpop.f32.mrf.mxu0  ;;  %v2415_v47 = vpop.permute.xlu1 %1508 }
 0x1e5   : > { %v1443_v2 = vmul.f32 0.7978846, %v1427_v61  ;;  %v2382_v3 = vadd.f32 %v1280_v1, %v2373_v56  ;;  %v1303_v37 = vpop.f32.mrf.mxu1 }
 0x1e6   : > { %v1444_v5 = vmul.f32 0.7978846, %v1428_v63  ;;  %v2385_v7 = vadd.f32 %v1303_v37, %v2373_v56  ;;  %v1234_v60 = vpop.f32.mrf.mxu2  ;;  %v1894_v8 = vpop.eup %1893 }
 0x1e7   : > { %1897 = vtanh.f32 %v1443_v2  ;;  %v1375_v30 = vmul.f32 0.044715, %v2382_v3  ;;  %v1257_v9 = vpop.f32.mrf.mxu3  ;;  %v2391_v12 = vadd.f32 %v1234_v60, %v2373_v56  ;;  %v1896_v14 = vpop.eup %1895  ;;  %v1468_v11 = vadd.f32 1.0, %v1894_v8 }
 0x1e8   : > { %1899 = vtanh.f32 %v1444_v5  ;;  %v1376_v38 = vmul.f32 0.044715, %v2385_v7  ;;  %v2394_v13 = vadd.f32 %v1257_v9, %v2373_v56  ;;  %v1467_v28 = vadd.f32 1.0, %v1896_v14 }
 0x1e9   : > { %v1391_v10 = vmul.f32 %v1375_v30, %v2382_v3  ;;  %v1373_v44 = vmul.f32 0.044715, %v2391_v12  ;;  %v1484_v29 = vmul.f32 %v1468_v11, %v1356_v15 }
 0x1ea   : > { %v1392_v20 = vmul.f32 %v1376_v38, %v2385_v7  ;;  %v1374_v25 = vmul.f32 0.044715, %v2394_v13  ;;  %v1483_v21 = vmul.f32 %v1467_v28, %v1355_v18 }
 0x1eb   : > { %v1407_v4 = vmul.f32 %v1391_v10, %v2382_v3  ;;  %v1389_v17 = vmul.f32 %v1373_v44, %v2391_v12  ;;  %v1512_v33 = vmul.f32 %v2412_v58, %v1484_v29  ;;  %v1358_v29 = vmul.f32 0.5, %v2394_v13 }
 0x1ec   : > { %v1408_v24 = vmul.f32 %v1392_v20, %v2385_v7  ;;  %v1283_v26 = vpop.f32.mrf.mxu0  ;;  %v1390_v16 = vmul.f32 %v1374_v25, %v2394_v13  ;;  %v1511_v38 = vmul.f32 %v2412_v58, %v1483_v21 }
 0x1ed   : > { %v1898_v27 = vpop.eup %1897  ;;  %v1423_v31 = vadd.f32 %v1407_v4, %v2382_v3  ;;  %v2404_v32 = vadd.f32 %v1283_v26, %v2377_v50  ;;  %v1306_v36 = vpop.f32.mrf.mxu1  ;;  %v1405_v42 = vmul.f32 %v1389_v17, %v2391_v12 }
 0x1ee   : > { %v1900_v39 = vpop.eup %1899  ;;  %v1475_v59 = vadd.f32 1.0, %v1898_v27  ;;  %v1424_v62 = vadd.f32 %v1408_v24, %v2385_v7  ;;  %v1237_v40 = vpop.f32.mrf.mxu2  ;;  %v1307_v43 = vadd.f32 %v1306_v36, %v2377_v50  ;;  %v1406_v48 = vmul.f32 %v1390_v16, %v2394_v13 }
 0x1ef   : > { %v1476_v35 = vadd.f32 1.0, %v1900_v39  ;;  %v1439_v41 = vmul.f32 0.7978846, %v1423_v31  ;;  %v1260_v34 = vpop.f32.mrf.mxu3  ;;  %v1383_v49 = vmul.f32 0.044715, %v2404_v32  ;;  %v1421_v52 = vadd.f32 %v1405_v42, %v2391_v12 }
 0x1f0   : > { %v1440_v6 = vmul.f32 0.7978846, %v1424_v62  ;;  %v1491_v19 = vmul.f32 %v1475_v59, %v1363_v22  ;;  %v1422_v45 = vadd.f32 %v1406_v48, %v2394_v13  ;;  %v1384_v55 = vmul.f32 0.044715, %v1307_v43 }
 0x1f1   : > { %v1492_v51 = vmul.f32 %v1476_v35, %v1364_v23  ;;  %1901 = vtanh.f32 %v1439_v41  ;;  %v1399_v53 = vmul.f32 %v1383_v49, %v2404_v32  ;;  %v1437_v46 = vmul.f32 0.7978846, %v1421_v52 }
 0x1f2   : > { %v1238_v57 = vadd.f32 %v1237_v40, %v2377_v50  ;;  %1903 = vtanh.f32 %v1440_v6  ;;  %v1438_v61 = vmul.f32 0.7978846, %v1422_v45  ;;  %v1261_v1 = vadd.f32 %v1260_v34, %v2377_v50 }
 0x1f3   : > { %v1520_v54 = vmul.f32 %v2415_v47, %v1492_v51  ;;  %v1415_v63 = vmul.f32 %v1399_v53, %v2404_v32  ;;  %v1519_v2 = vmul.f32 %v2415_v47, %v1491_v19  ;;  %v1400_v5 = vmul.f32 %v1384_v55, %v1307_v43 }
 0x1f4   : > { %1905 = vtanh.f32 %v1437_v46  ;;  %v1381_v8 = vmul.f32 0.044715, %v1238_v57  ;;  %v1382_v14 = vmul.f32 0.044715, %v1261_v1  ;;  %v1359_v24 = vmul.f32 0.5, %v2382_v3 }
 0x1f5   : > { %v1534_v37 = vadd.f32 %v1520_v54, %v1512_v33  ;;  %v1431_v60 = vadd.f32 %v1415_v63, %v2404_v32  ;;  %v1416_v10 = vmul.f32 %v1400_v5, %v1307_v43  ;;  %1907 = vtanh.f32 %v1438_v61 }
 0x1f6   : > { %v1326_v30 = vpop.f32.mrf.mxu2  ;;  %v1397_v18 = vmul.f32 %v1381_v8, %v1238_v57  ;;  %v1527_v4 = vadd.f32 %v1519_v2, %v1511_v38  ;;  %v1398_v22 = vmul.f32 %v1382_v14, %v1261_v1  ;;  %v1360_v27 = vmul.f32 0.5, %v2385_v7 }
 0x1f7   : > { %v1902_v9 = vpop.eup %1901  ;;  %v1349_v15 = vpop.f32.mrf.mxu3  ;;  %v1535_v11 = vrot.slane %v1534_v37, 4  ;;  %v1447_v20 = vmul.f32 0.7978846, %v1431_v60  ;;  %v1432_v44 = vadd.f32 %v1416_v10, %v1307_v43  ;;  %v1357_v39 = vmul.f32 0.5, %v2391_v12 }
 0x1f8   : > { %v1904_v23 = vpop.eup %1903  ;;  %v1471_v25 = vadd.f32 1.0, %v1902_v9  ;;  %v1413_v26 = vmul.f32 %v1397_v18, %v1238_v57  ;;  %v1414_v31 = vmul.f32 %v1398_v22, %v1261_v1  ;;  %v1528_v62 = vrot.slane %v1527_v4, 4 }
 0x1f9   : > { %1909 = vtanh.f32 %v1447_v20  ;;  %v1448_v28 = vmul.f32 0.7978846, %v1432_v44  ;;  %v1536_v36 = vadd.f32 %v1535_v11, %v1534_v37  ;;  %v1472_v16 = vadd.f32 1.0, %v1904_v23 }
 0x1fa   : > { %v1906_v17 = vpop.eup %1905  ;;  %v1429_v59 = vadd.f32 %v1413_v26, %v1238_v57  ;;  %v1367_v40 = vmul.f32 0.5, %v2404_v32  ;;  %v1487_v35 = vmul.f32 %v1471_v25, %v1359_v24  ;;  %v1368_v41 = vmul.f32 0.5, %v1307_v43 }
 0x1fb   : > { %1911 = vtanh.f32 %v1448_v28  ;;  %v1908_v3 = vpop.eup %1907  ;;  %v1430_v34 = vadd.f32 %v1414_v31, %v1261_v1  ;;  %v1469_v7 = vadd.f32 1.0, %v1906_v17  ;;  %v1365_v6 = vmul.f32 0.5, %v1238_v57 }
 0x1fc   : > { %v1445_v42 = vmul.f32 0.7978846, %v1429_v59  ;;  %v2433_v48 = vadd.f32 %v1326_v30, %v2373_v56  ;;  %v2436_v12 = vadd.f32 %v1349_v15, %v2373_v56  ;;  %v1537_v49 = vrot.slane %v1536_v36, 2 }
 0x1fd   : > { %v1366_v19 = vmul.f32 0.5, %v1261_v1  ;;  %v1446_v51 = vmul.f32 0.7978846, %v1430_v34  ;;  %v2438_v21 = vadd.f32 %v1528_v62, %v1527_v4  ;;  %v1488_v43 = vmul.f32 %v1472_v16, %v1360_v27 }
 0x1fe   : > { %1913 = vtanh.f32 %v1445_v42  ;;  %v1329_v32 = vpop.f32.mrf.mxu2  ;;  %v1470_v33 = vadd.f32 1.0, %v1908_v3  ;;  %v1515_v53 = vmul.f32 %v2412_v58, %v1487_v35  ;;  %v1377_v54 = vmul.f32 0.044715, %v2433_v48 }
 0x1ff   : > { %v1910_v13 = vpop.eup %1909  ;;  %v1352_v52 = vpop.f32.mrf.mxu3  ;;  %1915 = vtanh.f32 %v1446_v51  ;;  %v1378_v56 = vmul.f32 0.044715, %v2436_v12  ;;  %v1485_v55 = vmul.f32 %v1469_v7, %v1357_v39  ;;  %v2444_v61 = vadd.f32 %v1329_v32, %v2377_v50 }
 0x200   : > { %v1479_v45 = vadd.f32 1.0, %v1910_v13  ;;  %v2447_v63 = vadd.f32 %v1352_v52, %v2377_v50  ;;  %v1538_v1 = vadd.f32 %v1537_v49, %v1536_v36  ;;  %v1393_v37 = vmul.f32 %v1377_v54, %v2433_v48 }
 0x201   : > { %v1912_v46 = vpop.eup %1911  ;;  %v1394_v5 = vmul.f32 %v1378_v56, %v2436_v12  ;;  %v1516_v60 = vmul.f32 %v2412_v58, %v1488_v43  ;;  %v1486_v8 = vmul.f32 %v1470_v33, %v1358_v29  ;;  %v1385_v9 = vmul.f32 0.044715, %v2444_v61  ;;  %v1587_v56 = vpop.permute.xlu2 %1586 }
 0x202   : > { %v1495_v57 = vmul.f32 %v1479_v45, %v1367_v40  ;;  %v1480_v2 = vadd.f32 1.0, %v1912_v46  ;;  %v1409_v14 = vmul.f32 %v1393_v37, %v2433_v48  ;;  %v1386_v15 = vmul.f32 0.044715, %v2447_v63 }
 0x203   : > { %v1410_v50 = vmul.f32 %v1394_v5, %v2436_v12  ;;  %v1513_v11 = vmul.f32 %v2412_v58, %v1485_v55  ;;  %v1401_v4 = vmul.f32 %v1385_v9, %v2444_v61  ;;  %v1514_v3 = vmul.f32 %v2412_v58, %v1486_v8 }
 0x204   : > { %v1523_v30 = vmul.f32 %v2415_v47, %v1495_v57  ;;  %v1914_v38 = vpop.eup %1913  ;;  %v1496_v10 = vmul.f32 %v1480_v2, %v1368_v41  ;;  %v1425_v23 = vadd.f32 %v1409_v14, %v2433_v48  ;;  %v1402_v25 = vmul.f32 %v1386_v15, %v2447_v63 }
 0x205   : > { %v1477_v18 = vadd.f32 1.0, %v1914_v38  ;;  %v1916_v44 = vpop.eup %1915  ;;  %v1426_v24 = vadd.f32 %v1410_v50, %v2436_v12  ;;  %v1417_v31 = vmul.f32 %v1401_v4, %v2444_v61  ;;  %v1530_v43 = vrot.slane %v2438_v21, 2 }
 0x206   : > { %v1555_v20 = vadd.f32 %v1523_v30, %v1515_v53  ;;  %v1524_v22 = vmul.f32 %v2415_v47, %v1496_v10  ;;  %v1478_v28 = vadd.f32 1.0, %v1916_v44  ;;  %v1441_v36 = vmul.f32 0.7978846, %v1425_v23 }
 0x207   : > { %v1493_v27 = vmul.f32 %v1477_v18, %v1365_v6  ;;  %v1442_v39 = vmul.f32 0.7978846, %v1426_v24  ;;  %v1418_v29 = vmul.f32 %v1402_v25, %v2447_v63  ;;  %v1433_v40 = vadd.f32 %v1417_v31, %v2444_v61 }
 0x208   : > { %v1556_v26 = vrot.slane %v1555_v20, 4  ;;  %v1562_v17 = vadd.f32 %v1524_v22, %v1516_v60  ;;  %v1494_v16 = vmul.f32 %v1478_v28, %v1366_v19  ;;  %1917 = vtanh.f32 %v1441_v36 }
 0x209   : > { %v1521_v62 = vmul.f32 %v2415_v47, %v1493_v27  ;;  %v1434_v41 = vadd.f32 %v1418_v29, %v2447_v63  ;;  %1919 = vtanh.f32 %v1442_v39  ;;  %v1539_v6 = vrot.slane %v1538_v1, 1 }
 0x20a   : > { %v1557_v59 = vadd.f32 %v1556_v26, %v1555_v20  ;;  %v1563_v35 = vrot.slane %v1562_v17, 4  ;;  %v1522_v7 = vmul.f32 %v2415_v47, %v1494_v16  ;;  %v1449_v49 = vmul.f32 0.7978846, %v1433_v40 }
 0x20b   : > { %v1541_v34 = vadd.f32 %v1521_v62, %v1513_v11  ;;  %v1450_v51 = vmul.f32 0.7978846, %v1434_v41  ;;  %v1540_v55 = vadd.f32 %v1539_v6, %v1538_v1  ;;  %v1531_v8 = vadd.f32 %v1530_v43, %v2438_v21 }
 0x20c   : > { %v1558_v42 = vrot.slane %v1557_v59, 2  ;;  %v1564_v13 = vadd.f32 %v1563_v35, %v1562_v17  ;;  %v1548_v19 = vadd.f32 %v1522_v7, %v1514_v3  ;;  %1921 = vtanh.f32 %v1449_v49 }
 0x20d   : > { %v1542_v52 = vrot.slane %v1541_v34, 4  ;;  %1923 = vtanh.f32 %v1450_v51  ;;  %v2472_v38 = vperm.slane %v1587_v56, 0  ;;  %v1361_v15 = vmul.f32 0.5, %v2433_v48 }
 0x20e   : > { %v1559_v32 = vadd.f32 %v1558_v42, %v1557_v59  ;;  %v1565_v33 = vrot.slane %v1564_v13, 2  ;;  %v1549_v54 = vrot.slane %v1548_v19, 4  ;;  %v1918_v46 = vpop.eup %1917  ;;  %v1362_v1 = vmul.f32 0.5, %v2436_v12 }
 0x20f   : > { %v1543_v53 = vadd.f32 %v1542_v52, %v1541_v34  ;;  %v1920_v2 = vpop.eup %1919  ;;  %v1473_v60 = vadd.f32 1.0, %v1918_v46  ;;  %v1369_v18 = vmul.f32 0.5, %v2444_v61  ;;  %v1591_v4 = vadd.f32 %v2472_v38, %v1540_v55 }
 0x210   : > { %v1560_v45 = vrot.slane %v1559_v32, 1  ;;  %v1566_v57 = vadd.f32 %v1565_v33, %v1564_v13  ;;  %v1550_v5 = vadd.f32 %v1549_v54, %v1548_v19  ;;  %v1474_v9 = vadd.f32 1.0, %v1920_v2 }
 0x211   : > { %v1544_v37 = vrot.slane %v1543_v53, 2  ;;  %v1489_v23 = vmul.f32 %v1473_v60, %v1361_v15  ;;  %v1532_v25 = vrot.slane %v1531_v8, 1  ;;  %v1370_v27 = vmul.f32 0.5, %v2447_v63 }
 0x212   : > { %v1567_v30 = vrot.slane %v1566_v57, 1  ;;  %v1561_v10 = vadd.f32 %v1560_v45, %v1559_v32  ;;  %v1551_v50 = vrot.slane %v1550_v5, 2  ;;  %v1922_v11 = vpop.eup %1921  ;;  %v1490_v26 = vmul.f32 %v1474_v9, %v1362_v1 }
 0x213   : > { %v1545_v14 = vadd.f32 %v1544_v37, %v1543_v53  ;;  %v1924_v44 = vpop.eup %1923  ;;  %v1481_v24 = vadd.f32 1.0, %v1922_v11  ;;  %v1800_v39 = vadd.f32 0.21815601, %v1591_v4  ;;  %v1517_v59 = vmul.f32 %v2412_v58, %v1489_v23 }
 0x214   : > { %v1568_v20 = vadd.f32 %v1567_v30, %v1566_v57  ;;  %v1552_v21 = vadd.f32 %v1551_v50, %v1550_v5  ;;  %v1482_v28 = vadd.f32 1.0, %v1924_v44  ;;  %v1594_v36 = vadd.f32 %v2472_v38, %v1561_v10 }
 0x215   : > { %v1546_v22 = vrot.slane %v1545_v14, 1  ;;  %v1497_v17 = vmul.f32 %v1481_v24, %v1369_v18  ;;  %v1533_v40 = vadd.f32 %v1532_v25, %v1531_v8  ;;  %v1518_v63 = vmul.f32 %v2412_v58, %v1490_v26 }
 0x216   : > { %v1553_v48 = vrot.slane %v1552_v21, 1  ;;  %v1498_v12 = vmul.f32 %v1482_v28, %v1370_v27  ;;  %v1595_v61 = vadd.f32 %v2472_v38, %v1568_v20  ;;  %v1803_v34 = vadd.f32 0.21815601, %v1594_v36 }
 0x217   : > { %v1547_v31 = vadd.f32 %v1546_v22, %v1545_v14  ;;  %v1525_v62 = vmul.f32 %v2415_v47, %v1497_v17  ;;  %v1607_v13 = vmul.f32 0.5, %v1800_v39  ;;  %v1590_v19 = vadd.f32 %v2472_v38, %v1533_v40 }
 0x218   : > { %v1554_v29 = vadd.f32 %v1553_v48, %v1552_v21  ;;  %v1526_v3 = vmul.f32 %v2415_v47, %v1498_v12  ;;  %v1804_v6 = vadd.f32 0.21815601, %v1595_v61  ;;  %v1610_v45 = vmul.f32 0.5, %v1803_v34 }
 0x219   : > { %v1592_v16 = vadd.f32 %v2472_v38, %v1547_v31  ;;  %v1569_v35 = vadd.f32 %v1525_v62, %v1517_v59  ;;  %1925 = vtanh.f32 %v1607_v13  ;;  %v1799_v56 = vadd.f32 0.21815601, %v1590_v19 }
 0x21a   : > { %v1593_v41 = vadd.f32 %v2472_v38, %v1554_v29  ;;  %v1576_v7 = vadd.f32 %v1526_v3, %v1518_v63  ;;  %v1611_v53 = vmul.f32 0.5, %v1804_v6 }
 0x21b   : > { %v1801_v42 = vadd.f32 0.21815601, %v1592_v16  ;;  %v1570_v49 = vrot.slane %v1569_v35, 4  ;;  %v1606_v5 = vmul.f32 0.5, %v1799_v56 }
 0x21c   : > { %v1802_v51 = vadd.f32 0.21815601, %v1593_v41  ;;  %v1577_v52 = vrot.slane %v1576_v7, 4 }
 0x21d   : > { %v1608_v32 = vmul.f32 0.5, %v1801_v42  ;;  %v1571_v43 = vadd.f32 %v1570_v49, %v1569_v35 }
 0x21e   : > { %v1609_v33 = vmul.f32 0.5, %v1802_v51  ;;  %v1578_v58 = vadd.f32 %v1577_v52, %v1576_v7 }
 0x21f   : > { %v1572_v47 = vrot.slane %v1571_v43, 2  ;;  %1927 = vtanh.f32 %v1608_v32  ;;  %v1926_v2 = vpop.eup %1925 }
 0x220   : > { %v1579_v54 = vrot.slane %v1578_v58, 2  ;;  %1929 = vtanh.f32 %v1609_v33  ;;  %v1623_v44 = vadd.f32 1.0, %v1926_v2 }
 0x221   : > { %v1573_v46 = vadd.f32 %v1572_v47, %v1571_v43  ;;  %1931 = vtanh.f32 %v1610_v45 }
 0x222   : > { %v1580_v55 = vadd.f32 %v1579_v54, %v1578_v58  ;;  %1933 = vtanh.f32 %v1611_v53  ;;  %v1631_v27 = vmul.f32 0.5, %v1623_v44 }
 0x223   : > { %v1574_v57 = vrot.slane %v1573_v46, 1  ;;  %1935 = vtanh.f32 %v1606_v5 }
 0x224   : > { %v1581_v37 = vrot.slane %v1580_v55, 1  ;;  %v1639_v12 = vmul.f32 1.804, %v1631_v27 }
 0x225   : > { %v1928_v60 = vpop.eup %1927  ;;  %v1575_v8 = vadd.f32 %v1574_v57, %v1573_v46 }
 0x226   : > { %v1930_v30 = vpop.eup %1929  ;;  %v1582_v9 = vadd.f32 %v1581_v37, %v1580_v55  ;;  %v1624_v20 = vadd.f32 1.0, %v1928_v60  ;;  %v1808_v41 = vadd.f32 -1.0, %v1639_v12 }
 0x227   : > { %v1932_v10 = vpop.eup %1931  ;;  %v1596_v14 = vadd.f32 %v2472_v38, %v1575_v8  ;;  %v1625_v1 = vadd.f32 1.0, %v1930_v30 }
 0x228   : > { %v1934_v50 = vpop.eup %1933  ;;  %v1597_v15 = vadd.f32 %v2472_v38, %v1582_v9  ;;  %v1626_v22 = vadd.f32 1.0, %v1932_v10  ;;  %v1632_v24 = vmul.f32 0.5, %v1624_v20  ;;  %v1662_v19 = vrot.slane %v1808_v41, 7 }
 0x229   : > { %v1805_v11 = vadd.f32 0.21815601, %v1596_v14  ;;  %v1627_v21 = vadd.f32 1.0, %v1934_v50  ;;  %v1633_v25 = vmul.f32 0.5, %v1625_v1  ;;  %v1936_v26 = vpop.eup %1935 }
 0x22a   : > { %v1806_v18 = vadd.f32 0.21815601, %v1597_v15  ;;  %v1634_v28 = vmul.f32 0.5, %v1626_v22  ;;  %v1622_v48 = vadd.f32 1.0, %v1936_v26  ;;  %v1640_v38 = vmul.f32 1.804, %v1632_v24 }
 0x22b   : > { %v1612_v4 = vmul.f32 0.5, %v1805_v11  ;;  %v1635_v31 = vmul.f32 0.5, %v1627_v21  ;;  %v1641_v17 = vmul.f32 1.804, %v1633_v25 }
 0x22c   : > { %v1613_v23 = vmul.f32 0.5, %v1806_v18  ;;  %v1642_v61 = vmul.f32 1.804, %v1634_v28  ;;  %v1630_v16 = vmul.f32 0.5, %v1622_v48  ;;  %v1809_v40 = vadd.f32 -1.0, %v1640_v38 }
 0x22d   : > { %1937 = vtanh.f32 %v1612_v4  ;;  %v1643_v39 = vmul.f32 1.804, %v1635_v31  ;;  %v1810_v63 = vadd.f32 -1.0, %v1641_v17 }
 0x22e   : > { %1939 = vtanh.f32 %v1613_v23  ;;  %v1811_v42 = vadd.f32 -1.0, %v1642_v61  ;;  %v1638_v6 = vmul.f32 1.804, %v1630_v16  ;;  %v1663_v49 = vrot.slane %v1809_v40, 6 }
 0x22f   : > { %v1812_v34 = vadd.f32 -1.0, %v1643_v39  ;;  %v1664_v51 = vrot.slane %v1810_v63, 5 }
 0x230   : > { %v1665_v43 = vrot.slane %v1811_v42, 4  ;;  %v1807_v58 = vadd.f32 -1.0, %v1638_v6 }
 0x231   : > { %v1666_v33 = vrot.slane %v1812_v34, 3  ;;  %v1672_v47 = vsel %vm1671_vm5, %v1663_v49, %v1664_v51 }
 0x232   : > { %v1670_v54 = vsel %vm1669_vm4, %v1807_v58, %v1662_v19 }
 0x233   : > { %v1938_v36 = vpop.eup %1937  ;;  %v1676_v56 = vsel %vm1675_vm7, %v1665_v43, %v1666_v33  ;;  %v1674_v55 = vsel %vm1673_vm6, %v1670_v54, %v1672_v47 }
 0x234   : > { %v1940_v29 = vpop.eup %1939  ;;  %v1628_v59 = vadd.f32 1.0, %v1938_v36 }
 0x235   : > { %v1629_v62 = vadd.f32 1.0, %v1940_v29 }
 0x236   : > { %v1636_v3 = vmul.f32 0.5, %v1628_v59 }
 0x237   : > { %v1637_v35 = vmul.f32 0.5, %v1629_v62 }
 0x238   : > { %v1644_v7 = vmul.f32 1.804, %v1636_v3 }
 0x239   : > { %v1645_v13 = vmul.f32 1.804, %v1637_v35 }
 0x23a   : > { %v1813_v32 = vadd.f32 -1.0, %v1644_v7 }
 0x23b   : > { %v1814_v52 = vadd.f32 -1.0, %v1645_v13 }
 0x23c   : > { %v1667_v45 = vrot.slane %v1813_v32, 2 }
 0x23d   : > { %v1668_v53 = vrot.slane %v1814_v52, 1 }
 0x23f   : > { %v1678_v46 = vsel %vm1677_vm8, %v1667_v45, %v1668_v53 }
 0x240   : > { %v1680_v57 = vsel %vm1679_vm9, %v1676_v56, %v1678_v46 }
 0x241   : > { %v1682_v2 = vsel %vm1681_vm10, %v1674_v55, %v1680_v57 }
 0x242   : > { %1684 = vst [vmem:[%s337_s12] sm:$0xff] %v1682_v2 }
 0x243 PF: > { %s24_s17 = sadd.s32 1, %s1947_s17  }
 0x244   : > { %p21_p4 = scmp.ge.s32.totalorder %s24_s17, 4  }
 0x246   :  { %23 = sbr.rel (!%p21_p4) target bundleno = 3 (0x3), region = 102 }

</bundles_post_ra>
